<compile_context>
chip_gen: v6e
topology: v6e:2x2x1
jax: 0.10.0
libtpu: 0.0.40
codegen_flags: <defaults>
</compile_context>

<pallas_src>
import functools

import numpy as np
import jax
import jax.numpy as jnp
from jax import lax
from jax.experimental import pallas as pl
from jax.experimental.pallas import tpu as pltpu

EPS = 1e-5  # e2cnn InnerBatchNorm default


# ---------------------------------------------------------------------------
# in-kernel helpers
# ---------------------------------------------------------------------------
def _field_bn_relu(x2d, gamma, beta, g_mat, gt_mat):
  """InnerBatchNorm (train-mode stats) + ReLU on a row-folded (N, W*C) slab.

  g_mat  : (W*C, nf) one-hot field-membership matrix (host precomputed)
  gt_mat : (nf, W*C) its transpose
  gamma/beta : (1, nf).  Statistics are shared over rows, spatial positions and the
  fs channels of each field.  The four per-BN matmuls of the previous revision are
  batched into two (rows stacked), all statistics math stays in f32.
  """
  n, wc = x2d.shape
  nf = g_mat.shape[1]
  cnt = jnp.float32(n * (wc // nf))                       # N * W * fs per field
  sum_l = jnp.sum(x2d, axis=0, keepdims=True)             # (1, W*C)
  sq_l = jnp.sum(x2d * x2d, axis=0, keepdims=True)        # (1, W*C)
  stats = jnp.concatenate([sum_l, sq_l], axis=0)          # (2, W*C)
  f = jnp.dot(stats, g_mat.astype(jnp.float32),
              preferred_element_type=jnp.float32)         # (2, nf)  one MXU issue
  mean_f = f[0:1, :] / cnt
  var_f = jnp.maximum(f[1:2, :] / cnt - mean_f * mean_f, 0.0)  # clamp one-pass cancellation
  inv_f = lax.rsqrt(var_f + EPS)
  scale_f = gamma * inv_f
  shift_f = beta - mean_f * scale_f
  ss = jnp.concatenate([scale_f, shift_f], axis=0)        # (2, nf)
  ss_l = jnp.dot(ss, gt_mat.astype(jnp.float32),
                 preferred_element_type=jnp.float32)      # (2, W*C) one MXU issue
  return jnp.maximum(x2d * ss_l[0:1, :] + ss_l[1:2, :], 0.0)


def _conv3x3_folded(x2d, wcat, mask_up, mask_dn, b, himg, stride, ho, mm_dtype):
  """3x3 conv (padding=1, stride) on a row-folded (B*H, W*Cin) slab.

  dx taps + W-direction stride are folded into `wcat` ((3*W*Cin, Wo*Cout)); the dy
  taps are realized with two sublane row shifts (slice+concat; pltpu.roll requires a
  non-negative shift and this form is also interpret-safe) masked by host-precomputed
  per-image border masks, then one lane concat -> one MXU matmul with K = 3*W*Cin.
  """
  n, wc = x2d.shape
  zrow = jnp.zeros((1, wc), dtype=x2d.dtype)
  up = jnp.concatenate([zrow, x2d[:n - 1, :]], axis=0) * mask_up   # row r-1 (masked at image top)
  dn = jnp.concatenate([x2d[1:, :], zrow], axis=0) * mask_dn       # row r+1 (masked at image bottom)
  cat = jnp.concatenate(
      [up.astype(mm_dtype), x2d.astype(mm_dtype), dn.astype(mm_dtype)],
      axis=1)                                                      # (N, 3*W*Cin) in mm_dtype
  if stride != 1:
    # Subsample rows BEFORE the matmul: halves MXU pushes at stride=2.
    # TODO(synk): a gridded variant should fold the row stride into the BlockSpec
    # index_map instead of this in-kernel strided slice.
    k = cat.shape[1]
    cat = cat.reshape(b, himg, k)[:, ::stride, :].reshape(b * ho, k)
  return jnp.dot(cat, wcat, preferred_element_type=jnp.float32)    # (B*Ho, Wo*Cout) f32


# ---------------------------------------------------------------------------
# fused bottleneck kernel (whole tensor VMEM-resident; demo shapes are tiny)
# ---------------------------------------------------------------------------
def _bottleneck_kernel(b, h, stride, ho, nf1, nf3, has_sc_conv, share_masks12,
                       mm_dtype, *refs):
  refs = list(refs)
  x_ref, w1_ref, w2_ref, w3_ref = refs[:4]
  pos = 4
  if has_sc_conv:
    ws_ref = refs[pos]; pos += 1
  bn_ref, bord_ref, gm1_ref, gmt1_ref = refs[pos:pos + 4]; pos += 4
  if share_masks12:
    gm2_ref, gmt2_ref = gm1_ref, gmt1_ref
  else:
    gm2_ref, gmt2_ref = refs[pos:pos + 2]; pos += 2
  gm3_ref, gmt3_ref = refs[pos:pos + 2]; pos += 2
  o_ref = refs[pos]

  x = x_ref[...]                                            # (B*H, W*Cin) f32

  # packed per-field BN affine params: row 0 = gammas, row 1 = betas
  bn = bn_ref[...]                                          # (2, nf_total) f32
  o1, o2, o3 = 0, nf1, 2 * nf1
  g1, b1 = bn[0:1, o1:o1 + nf1], bn[1:2, o1:o1 + nf1]
  g2, b2 = bn[0:1, o2:o2 + nf1], bn[1:2, o2:o2 + nf1]
  g3, b3 = bn[0:1, o3:o3 + nf3], bn[1:2, o3:o3 + nf3]
  if has_sc_conv:
    o4 = o3 + nf3
    gs, bs = bn[0:1, o4:o4 + nf3], bn[1:2, o4:o4 + nf3]

  # host-precomputed per-image border masks (shared by both 3x3 convs)
  border = bord_ref[...]                                    # (B*H, 2) f32
  mask_up, mask_dn = border[:, 0:1], border[:, 1:2]

  gm3, gmt3 = gm3_ref[...], gmt3_ref[...]

  # conv1: 1x1 conv == block-diagonal folded matmul, then InnerBN + ReLU
  h1 = jnp.dot(x.astype(mm_dtype), w1_ref[...], preferred_element_type=jnp.float32)
  h1 = _field_bn_relu(h1, g1, b1, gm1_ref[...], gmt1_ref[...])

  # conv2: 3x3, padding=1, stride, then InnerBN + ReLU
  h2 = _conv3x3_folded(h1, w2_ref[...], mask_up, mask_dn, b, h, stride, ho, mm_dtype)
  h2 = _field_bn_relu(h2, g2, b2, gm2_ref[...], gmt2_ref[...])

  # conv3: 1x1 conv, then InnerBN + ReLU
  h3 = jnp.dot(h2.astype(mm_dtype), w3_ref[...], preferred_element_type=jnp.float32)
  h3 = _field_bn_relu(h3, g3, b3, gm3, gmt3)

  # shortcut branch
  if has_sc_conv:
    sc = _conv3x3_folded(x, ws_ref[...], mask_up, mask_dn, b, h, stride, ho, mm_dtype)
    sc = _field_bn_relu(sc, gs, bs, gm3, gmt3)
  else:
    sc = x  # identity (stride == 1 and Cin == Cout -> same folded shape)

  o_ref[...] = h3 + sc                                      # (B*Ho, Wo*Cout) lane-dense


# ---------------------------------------------------------------------------
# host-side weight / mask folding
# ---------------------------------------------------------------------------
def _fold_1x1(w_io, w_sp):
  """(Cin, Cout) 1x1 conv -> block-diagonal (W*Cin, W*Cout) folded matrix."""
  return jnp.kron(jnp.eye(w_sp, dtype=w_io.dtype), w_io)


def _fold_3x3(w_hwio, w_sp, wo_sp, stride):
  """(3,3,Cin,Cout) conv -> (3*W*Cin, Wo*Cout): dx taps + W-stride folded in.

  K index = dy*(W*Cin) + x*Cin + ci matches the [row-1, row, row+1] lane concat built
  inside the kernel; zero-padding along W falls out of the selector.
  """
  kh, kw, ci, co = w_hwio.shape
  dx = jnp.arange(kw)[:, None, None]
  xi = jnp.arange(w_sp)[None, :, None]
  xo = jnp.arange(wo_sp)[None, None, :]
  sel = (xi == stride * xo + dx - 1).astype(w_hwio.dtype)      # (3, W, Wo)
  m = jnp.einsum("dxo,ydic->yxioc", sel, w_hwio)               # (3, W, Ci, Wo, Co)
  return m.reshape(kh * w_sp * ci, wo_sp * co)


def _field_masks(w_sp, c, fs, dtype):
  """One-hot field-membership matrices for a folded (W*C) lane axis."""
  nf = c // fs
  g = np.zeros((w_sp * c, nf), np.float32)
  for xp in range(w_sp):
    for ci in range(c):
      g[xp * c + ci, ci // fs] = 1.0
  return (jnp.asarray(g, dtype=dtype),
          jnp.asarray(np.ascontiguousarray(g.T), dtype=dtype))


# ---------------------------------------------------------------------------
# wrapper
# ---------------------------------------------------------------------------
def equ_bottleneck_forward(x_nchw, params, *, so2_gspace, stride,
                           matmul_dtype=jnp.bfloat16):
  fs = 2 * so2_gspace
  x = jnp.transpose(x_nchw, (0, 2, 3, 1)).astype(jnp.float32)   # NCHW -> NHWC
  b, h, w, c_in = x.shape
  c_h = params["w1"].shape[1]
  c_out = params["w3"].shape[1]
  assert c_in % fs == 0 and c_h % fs == 0 and c_out % fs == 0, (
      "channel counts must be multiples of 2*so2_gspace")
  ho = (h - 1) // stride + 1
  wo = (w - 1) // stride + 1
  has_sc_conv = (stride != 1) or (c_in != c_out)
  if not has_sc_conv:
    assert stride == 1 and c_in == c_out  # identity-shortcut invariant

  # Row-folded, lane-dense layout: (B*H, W*C)
  x_fold = x.reshape(b * h, w * c_in)

  # Fold weights on the host (tiny); matmul operands in matmul_dtype.
  w1_blk = _fold_1x1(params["w1"], w).astype(matmul_dtype)              # (W*Cin , W*Ch)
  w2_cat = _fold_3x3(params["w2"], w, wo, stride).astype(matmul_dtype)  # (3*W*Ch, Wo*Ch)
  w3_blk = _fold_1x1(params["w3"], wo).astype(matmul_dtype)             # (Wo*Ch , Wo*Cout)

  nf1 = c_h // fs
  nf3 = c_out // fs

  # pack all gamma/beta vectors into one (2, nf_total) input
  g_list = [params["g1"], params["g2"], params["g3"]]
  b_list = [params["b1"], params["b2"], params["b3"]]
  if has_sc_conv:
    g_list.append(params["gs"]); b_list.append(params["bs"])
  bn_pack = jnp.concatenate(
      [jnp.concatenate(g_list, axis=1), jnp.concatenate(b_list, axis=1)],
      axis=0).astype(jnp.float32)

  # per-row image-border masks (preserve per-image top/bottom zeroing of dy taps)
  hi = np.arange(b * h) % h
  border = jnp.asarray(
      np.stack([(hi > 0), (hi < h - 1)], axis=1).astype(np.float32))    # (B*H, 2)

  gm1, gmt1 = _field_masks(w, c_h, fs, matmul_dtype)    # BN1 on (B*H , W*Ch)
  share_masks12 = (wo == w)                             # BN2 lane layout == BN1 layout
  if not share_masks12:
    gm2, gmt2 = _field_masks(wo, c_h, fs, matmul_dtype)
  gm3, gmt3 = _field_masks(wo, c_out, fs, matmul_dtype)  # BN3 / shortcut BN

  inputs = [x_fold, w1_blk, w2_cat, w3_blk]
  if has_sc_conv:
    ws_cat = _fold_3x3(params["ws"], w, wo, stride).astype(matmul_dtype)  # (3*W*Cin, Wo*Cout)
    inputs.append(ws_cat)
  inputs += [bn_pack, border, gm1, gmt1]
  if not share_masks12:
    inputs += [gm2, gmt2]
  inputs += [gm3, gmt3]

  kernel = functools.partial(_bottleneck_kernel, b, h, stride, ho, nf1, nf3,
                             has_sc_conv, share_masks12, matmul_dtype)
  vmem = pl.BlockSpec(memory_space=pltpu.MemorySpace.VMEM)

  out_fold = pl.pallas_call(
      kernel,
      out_shape=jax.ShapeDtypeStruct((b * ho, wo * c_out), jnp.float32),
      in_specs=[vmem] * len(inputs),
      out_specs=vmem,
  )(*inputs)

  out_nhwc = out_fold.reshape(b, ho, wo, c_out)
  return jnp.transpose(out_nhwc, (0, 3, 1, 2))  # NHWC -> NCHW


# ---------------------------------------------------------------------------
# pure-JAX reference for verification
# ---------------------------------------------------------------------------
def _ref_conv(x, w_hwio, stride, pad):
  return lax.conv_general_dilated(
      x, w_hwio, window_strides=(stride, stride),
      padding=[(pad, pad), (pad, pad)],
      dimension_numbers=("NHWC", "HWIO", "NHWC"),
      precision=lax.Precision.HIGHEST)


def _ref_bn_relu(x, gamma, beta, fs):
  b, h, w, c = x.shape
  nf = c // fs
  xr = x.reshape(b, h, w, nf, fs)
  mean = jnp.mean(xr, axis=(0, 1, 2, 4), keepdims=True)
  var = jnp.mean((xr - mean) ** 2, axis=(0, 1, 2, 4), keepdims=True)
  g = gamma.reshape(1, 1, 1, nf, 1)
  be = beta.reshape(1, 1, 1, nf, 1)
  y = ((xr - mean) / jnp.sqrt(var + EPS) * g + be).reshape(b, h, w, c)
  return jnp.maximum(y, 0.0)


def reference_forward(x_nchw, params, *, so2_gspace, stride):
  fs = 2 * so2_gspace
  x = jnp.transpose(x_nchw, (0, 2, 3, 1)).astype(jnp.float32)
  c_in = x.shape[-1]
  c_out = params["w3"].shape[1]
  w1 = params["w1"][None, None]
  w3 = params["w3"][None, None]
  h = _ref_bn_relu(_ref_conv(x, w1, 1, 0), params["g1"], params["b1"], fs)
  h = _ref_bn_relu(_ref_conv(h, params["w2"], stride, 1), params["g2"], params["b2"], fs)
  h = _ref_bn_relu(_ref_conv(h, w3, 1, 0), params["g3"], params["b3"], fs)
  if stride != 1 or c_in != c_out:
    s = _ref_bn_relu(_ref_conv(x, params["ws"], stride, 1), params["gs"], params["bs"], fs)
  else:
    s = x
  return jnp.transpose(h + s, (0, 3, 1, 2))


# ---------------------------------------------------------------------------
if __name__ == "__main__":
  # module hyper-params (small, consistent with __init__ constraints)
  so2_gspace = 2                     # gspace_dim = 4
  in_planes, planes, stride, expansion = 8, 4, 1, 4
  fs = 2 * so2_gspace
  c_h = planes                       # hidden channels
  c_out = expansion * planes         # output channels (16) -> shortcut conv path
  B, H, W = 2, 8, 8

  key = jax.random.PRNGKey(0)
  ks = jax.random.split(key, 13)
  sc = 0.2
  params = dict(
      w1=sc * jax.random.normal(ks[0], (in_planes, c_h), jnp.float32),      # 1x1 (Cin,Cout)
      w2=sc * jax.random.normal(ks[1], (3, 3, c_h, c_h), jnp.float32),      # 3x3 HWIO
      w3=sc * jax.random.normal(ks[2], (c_h, c_out), jnp.float32),          # 1x1 (Cin,Cout)
      ws=sc * jax.random.normal(ks[3], (3, 3, in_planes, c_out), jnp.float32),
      g1=1.0 + 0.1 * jax.random.normal(ks[4], (1, c_h // fs), jnp.float32),
      b1=0.1 * jax.random.normal(ks[5], (1, c_h // fs), jnp.float32),
      g2=1.0 + 0.1 * jax.random.normal(ks[6], (1, c_h // fs), jnp.float32),
      b2=0.1 * jax.random.normal(ks[7], (1, c_h // fs), jnp.float32),
      g3=1.0 + 0.1 * jax.random.normal(ks[8], (1, c_out // fs), jnp.float32),
      b3=0.1 * jax.random.normal(ks[9], (1, c_out // fs), jnp.float32),
      gs=1.0 + 0.1 * jax.random.normal(ks[10], (1, c_out // fs), jnp.float32),
      bs=0.1 * jax.random.normal(ks[11], (1, c_out // fs), jnp.float32),
  )
  x = jax.random.normal(ks[12], (B, in_planes, H, W), jnp.float32)  # NCHW like PyTorch

  ref = reference_forward(x, params, so2_gspace=so2_gspace, stride=stride)

  # exact-math path (f32 matmul operands): tight check against the reference
  out_f32 = jax.block_until_ready(
      equ_bottleneck_forward(x, params, so2_gspace=so2_gspace, stride=stride,
                             matmul_dtype=jnp.float32))
  assert out_f32.shape == ref.shape, (out_f32.shape, ref.shape)
  assert jnp.allclose(out_f32, ref, atol=2e-3, rtol=2e-3), float(
      jnp.max(jnp.abs(out_f32 - ref)))

  # default fast path (bf16 matmul operands, f32 accumulation & BN statistics)
  out_bf16 = jax.block_until_ready(
      equ_bottleneck_forward(x, params, so2_gspace=so2_gspace, stride=stride,
                             matmul_dtype=jnp.bfloat16))
  assert out_bf16.shape == ref.shape, (out_bf16.shape, ref.shape)
  assert jnp.allclose(out_bf16, ref, atol=1e-1, rtol=1e-1), float(
      jnp.max(jnp.abs(out_bf16 - ref)))

  print("KERNEL_OK")
</pallas_src>

<mosaic_0001>
module attributes {stable_mosaic.version = 11 : i64} {
  func.func @_bottleneck_kernel(%arg0: memref<16x64xf32, #tpu.memory_space<vmem>>, %arg1: memref<64x32xf32, #tpu.memory_space<vmem>>, %arg2: memref<96x32xf32, #tpu.memory_space<vmem>>, %arg3: memref<32x128xf32, #tpu.memory_space<vmem>>, %arg4: memref<192x128xf32, #tpu.memory_space<vmem>>, %arg5: memref<2x10xf32, #tpu.memory_space<vmem>>, %arg6: memref<16x2xf32, #tpu.memory_space<vmem>>, %arg7: memref<32x1xf32, #tpu.memory_space<vmem>>, %arg8: memref<1x32xf32, #tpu.memory_space<vmem>>, %arg9: memref<128x4xf32, #tpu.memory_space<vmem>>, %arg10: memref<4x128xf32, #tpu.memory_space<vmem>>, %arg11: memref<16x128xf32, #tpu.memory_space<vmem>>) attributes {dimension_semantics = [], scalar_prefetch = 0 : i64, scratch_operands = 0 : i64, tpu.core_type = #tpu.core_type<tc>} {
    %c0 = arith.constant 0 : index
    %c0_0 = arith.constant 0 : index
    %0 = vector.load %arg0[%c0, %c0_0] : memref<16x64xf32, #tpu.memory_space<vmem>>, vector<16x64xf32>
    %c0_1 = arith.constant 0 : index
    %c0_2 = arith.constant 0 : index
    %1 = vector.load %arg5[%c0_1, %c0_2] : memref<2x10xf32, #tpu.memory_space<vmem>>, vector<2x10xf32>
    %2 = vector.extract_strided_slice %1 {offsets = [0, 0], sizes = [1, 1], strides = [1, 1]} : vector<2x10xf32> to vector<1x1xf32>
    %3 = vector.extract_strided_slice %1 {offsets = [1, 0], sizes = [1, 1], strides = [1, 1]} : vector<2x10xf32> to vector<1x1xf32>
    %4 = vector.extract_strided_slice %1 {offsets = [0, 1], sizes = [1, 1], strides = [1, 1]} : vector<2x10xf32> to vector<1x1xf32>
    %5 = vector.extract_strided_slice %1 {offsets = [1, 1], sizes = [1, 1], strides = [1, 1]} : vector<2x10xf32> to vector<1x1xf32>
    %6 = vector.extract_strided_slice %1 {offsets = [0, 2], sizes = [1, 4], strides = [1, 1]} : vector<2x10xf32> to vector<1x4xf32>
    %7 = vector.extract_strided_slice %1 {offsets = [1, 2], sizes = [1, 4], strides = [1, 1]} : vector<2x10xf32> to vector<1x4xf32>
    %8 = vector.extract_strided_slice %1 {offsets = [0, 6], sizes = [1, 4], strides = [1, 1]} : vector<2x10xf32> to vector<1x4xf32>
    %9 = vector.extract_strided_slice %1 {offsets = [1, 6], sizes = [1, 4], strides = [1, 1]} : vector<2x10xf32> to vector<1x4xf32>
    %c0_3 = arith.constant 0 : index
    %c0_4 = arith.constant 0 : index
    %10 = vector.load %arg6[%c0_3, %c0_4] : memref<16x2xf32, #tpu.memory_space<vmem>>, vector<16x2xf32>
    %11 = vector.extract_strided_slice %10 {offsets = [0, 0], sizes = [16, 1], strides = [1, 1]} : vector<16x2xf32> to vector<16x1xf32>
    %12 = vector.extract_strided_slice %10 {offsets = [0, 1], sizes = [16, 1], strides = [1, 1]} : vector<16x2xf32> to vector<16x1xf32>
    %c0_5 = arith.constant 0 : index
    %c0_6 = arith.constant 0 : index
    %13 = vector.load %arg9[%c0_5, %c0_6] : memref<128x4xf32, #tpu.memory_space<vmem>>, vector<128x4xf32>
    %c0_7 = arith.constant 0 : index
    %c0_8 = arith.constant 0 : index
    %14 = vector.load %arg10[%c0_7, %c0_8] : memref<4x128xf32, #tpu.memory_space<vmem>>, vector<4x128xf32>
    %c0_9 = arith.constant 0 : index
    %c0_10 = arith.constant 0 : index
    %15 = vector.load %arg1[%c0_9, %c0_10] : memref<64x32xf32, #tpu.memory_space<vmem>>, vector<64x32xf32>
    %cst = arith.constant dense<0.000000e+00> : vector<16x32xf32>
    %16 = tpu.matmul %0, %15, %cst {dimension_numbers = #tpu.dot_dimension_numbers<[1], [0], [0], [1], [0, 0, 1, 1], [], []>} : vector<16x64xf32>, vector<64x32xf32>, vector<16x32xf32> -> vector<16x32xf32>
    %c0_11 = arith.constant 0 : index
    %c0_12 = arith.constant 0 : index
    %17 = vector.load %arg7[%c0_11, %c0_12] : memref<32x1xf32, #tpu.memory_space<vmem>>, vector<32x1xf32>
    %c0_13 = arith.constant 0 : index
    %c0_14 = arith.constant 0 : index
    %18 = vector.load %arg8[%c0_13, %c0_14] : memref<1x32xf32, #tpu.memory_space<vmem>>, vector<1x32xf32>
    %cst_15 = arith.constant dense<0.000000e+00> : vector<32xf32>
    %19 = vector.multi_reduction <add>, %16, %cst_15 [0] : vector<16x32xf32> to vector<32xf32>
    %20 = vector.shape_cast %19 : vector<32xf32> to vector<1x32xf32>
    %21 = arith.mulf %16, %16 : vector<16x32xf32>
    %cst_16 = arith.constant dense<0.000000e+00> : vector<32xf32>
    %22 = vector.multi_reduction <add>, %21, %cst_16 [0] : vector<16x32xf32> to vector<32xf32>
    %23 = vector.shape_cast %22 : vector<32xf32> to vector<1x32xf32>
    %24 = tpu.concatenate %20, %23 in 0 : vector<1x32xf32>, vector<1x32xf32> -> vector<2x32xf32>
    %cst_17 = arith.constant dense<0.000000e+00> : vector<2x1xf32>
    %25 = tpu.matmul %24, %17, %cst_17 {dimension_numbers = #tpu.dot_dimension_numbers<[1], [0], [0], [1], [0, 0, 1, 1], [], []>} : vector<2x32xf32>, vector<32x1xf32>, vector<2x1xf32> -> vector<2x1xf32>
    %26 = vector.extract_strided_slice %25 {offsets = [0, 0], sizes = [1, 1], strides = [1, 1]} : vector<2x1xf32> to vector<1x1xf32>
    %cst_18 = arith.constant 5.120000e+02 : f32
    %27 = vector.broadcast %cst_18 : f32 to vector<1x1xf32>
    %28 = arith.divf %26, %27 : vector<1x1xf32>
    %29 = vector.extract_strided_slice %25 {offsets = [1, 0], sizes = [1, 1], strides = [1, 1]} : vector<2x1xf32> to vector<1x1xf32>
    %cst_19 = arith.constant 5.120000e+02 : f32
    %30 = vector.broadcast %cst_19 : f32 to vector<1x1xf32>
    %31 = arith.divf %29, %30 : vector<1x1xf32>
    %32 = arith.mulf %28, %28 : vector<1x1xf32>
    %33 = arith.subf %31, %32 : vector<1x1xf32>
    %cst_20 = arith.constant 0.000000e+00 : f32
    %34 = vector.broadcast %cst_20 : f32 to vector<1x1xf32>
    %35 = arith.maximumf %33, %34 : vector<1x1xf32>
    %cst_21 = arith.constant 9.99999974E-6 : f32
    %36 = vector.broadcast %cst_21 : f32 to vector<1x1xf32>
    %37 = arith.addf %35, %36 : vector<1x1xf32>
    %38 = math.rsqrt %37 : vector<1x1xf32>
    %39 = arith.mulf %2, %38 : vector<1x1xf32>
    %40 = arith.mulf %28, %39 : vector<1x1xf32>
    %41 = arith.subf %3, %40 : vector<1x1xf32>
    %42 = tpu.concatenate %39, %41 in 0 : vector<1x1xf32>, vector<1x1xf32> -> vector<2x1xf32>
    %cst_22 = arith.constant dense<0.000000e+00> : vector<2x32xf32>
    %43 = tpu.matmul %42, %18, %cst_22 {dimension_numbers = #tpu.dot_dimension_numbers<[1], [0], [0], [1], [0, 0, 1, 1], [], []>} : vector<2x1xf32>, vector<1x32xf32>, vector<2x32xf32> -> vector<2x32xf32>
    %44 = vector.extract_strided_slice %43 {offsets = [0, 0], sizes = [1, 32], strides = [1, 1]} : vector<2x32xf32> to vector<1x32xf32>
    %45 = vector.broadcast %44 : vector<1x32xf32> to vector<16x32xf32>
    %46 = arith.mulf %16, %45 : vector<16x32xf32>
    %47 = vector.extract_strided_slice %43 {offsets = [1, 0], sizes = [1, 32], strides = [1, 1]} : vector<2x32xf32> to vector<1x32xf32>
    %48 = vector.broadcast %47 : vector<1x32xf32> to vector<16x32xf32>
    %49 = arith.addf %46, %48 : vector<16x32xf32>
    %cst_23 = arith.constant 0.000000e+00 : f32
    %50 = vector.broadcast %cst_23 : f32 to vector<16x32xf32>
    %51 = arith.maximumf %49, %50 : vector<16x32xf32>
    %c0_24 = arith.constant 0 : index
    %c0_25 = arith.constant 0 : index
    %52 = vector.load %arg2[%c0_24, %c0_25] : memref<96x32xf32, #tpu.memory_space<vmem>>, vector<96x32xf32>
    %cst_26 = arith.constant 0.000000e+00 : f32
    %53 = vector.broadcast %cst_26 : f32 to vector<1x32xf32>
    %54 = vector.extract_strided_slice %51 {offsets = [0, 0], sizes = [15, 32], strides = [1, 1]} : vector<16x32xf32> to vector<15x32xf32>
    %55 = tpu.concatenate %53, %54 in 0 : vector<1x32xf32>, vector<15x32xf32> -> vector<16x32xf32>
    %56 = vector.broadcast %11 : vector<16x1xf32> to vector<16x32xf32>
    %57 = arith.mulf %55, %56 : vector<16x32xf32>
    %58 = vector.extract_strided_slice %51 {offsets = [1, 0], sizes = [15, 32], strides = [1, 1]} : vector<16x32xf32> to vector<15x32xf32>
    %59 = tpu.concatenate %58, %53 in 0 : vector<15x32xf32>, vector<1x32xf32> -> vector<16x32xf32>
    %60 = vector.broadcast %12 : vector<16x1xf32> to vector<16x32xf32>
    %61 = arith.mulf %59, %60 : vector<16x32xf32>
    %62 = tpu.concatenate %57, %51, %61 in 1 : vector<16x32xf32>, vector<16x32xf32>, vector<16x32xf32> -> vector<16x96xf32>
    %cst_27 = arith.constant dense<0.000000e+00> : vector<16x32xf32>
    %63 = tpu.matmul %62, %52, %cst_27 {dimension_numbers = #tpu.dot_dimension_numbers<[1], [0], [0], [1], [0, 0, 1, 1], [], []>} : vector<16x96xf32>, vector<96x32xf32>, vector<16x32xf32> -> vector<16x32xf32>
    %c0_28 = arith.constant 0 : index
    %c0_29 = arith.constant 0 : index
    %64 = vector.load %arg7[%c0_28, %c0_29] : memref<32x1xf32, #tpu.memory_space<vmem>>, vector<32x1xf32>
    %c0_30 = arith.constant 0 : index
    %c0_31 = arith.constant 0 : index
    %65 = vector.load %arg8[%c0_30, %c0_31] : memref<1x32xf32, #tpu.memory_space<vmem>>, vector<1x32xf32>
    %cst_32 = arith.constant dense<0.000000e+00> : vector<32xf32>
    %66 = vector.multi_reduction <add>, %63, %cst_32 [0] : vector<16x32xf32> to vector<32xf32>
    %67 = vector.shape_cast %66 : vector<32xf32> to vector<1x32xf32>
    %68 = arith.mulf %63, %63 : vector<16x32xf32>
    %cst_33 = arith.constant dense<0.000000e+00> : vector<32xf32>
    %69 = vector.multi_reduction <add>, %68, %cst_33 [0] : vector<16x32xf32> to vector<32xf32>
    %70 = vector.shape_cast %69 : vector<32xf32> to vector<1x32xf32>
    %71 = tpu.concatenate %67, %70 in 0 : vector<1x32xf32>, vector<1x32xf32> -> vector<2x32xf32>
    %cst_34 = arith.constant dense<0.000000e+00> : vector<2x1xf32>
    %72 = tpu.matmul %71, %64, %cst_34 {dimension_numbers = #tpu.dot_dimension_numbers<[1], [0], [0], [1], [0, 0, 1, 1], [], []>} : vector<2x32xf32>, vector<32x1xf32>, vector<2x1xf32> -> vector<2x1xf32>
    %73 = vector.extract_strided_slice %72 {offsets = [0, 0], sizes = [1, 1], strides = [1, 1]} : vector<2x1xf32> to vector<1x1xf32>
    %cst_35 = arith.constant 5.120000e+02 : f32
    %74 = vector.broadcast %cst_35 : f32 to vector<1x1xf32>
    %75 = arith.divf %73, %74 : vector<1x1xf32>
    %76 = vector.extract_strided_slice %72 {offsets = [1, 0], sizes = [1, 1], strides = [1, 1]} : vector<2x1xf32> to vector<1x1xf32>
    %cst_36 = arith.constant 5.120000e+02 : f32
    %77 = vector.broadcast %cst_36 : f32 to vector<1x1xf32>
    %78 = arith.divf %76, %77 : vector<1x1xf32>
    %79 = arith.mulf %75, %75 : vector<1x1xf32>
    %80 = arith.subf %78, %79 : vector<1x1xf32>
    %cst_37 = arith.constant 0.000000e+00 : f32
    %81 = vector.broadcast %cst_37 : f32 to vector<1x1xf32>
    %82 = arith.maximumf %80, %81 : vector<1x1xf32>
    %cst_38 = arith.constant 9.99999974E-6 : f32
    %83 = vector.broadcast %cst_38 : f32 to vector<1x1xf32>
    %84 = arith.addf %82, %83 : vector<1x1xf32>
    %85 = math.rsqrt %84 : vector<1x1xf32>
    %86 = arith.mulf %4, %85 : vector<1x1xf32>
    %87 = arith.mulf %75, %86 : vector<1x1xf32>
    %88 = arith.subf %5, %87 : vector<1x1xf32>
    %89 = tpu.concatenate %86, %88 in 0 : vector<1x1xf32>, vector<1x1xf32> -> vector<2x1xf32>
    %cst_39 = arith.constant dense<0.000000e+00> : vector<2x32xf32>
    %90 = tpu.matmul %89, %65, %cst_39 {dimension_numbers = #tpu.dot_dimension_numbers<[1], [0], [0], [1], [0, 0, 1, 1], [], []>} : vector<2x1xf32>, vector<1x32xf32>, vector<2x32xf32> -> vector<2x32xf32>
    %91 = vector.extract_strided_slice %90 {offsets = [0, 0], sizes = [1, 32], strides = [1, 1]} : vector<2x32xf32> to vector<1x32xf32>
    %92 = vector.broadcast %91 : vector<1x32xf32> to vector<16x32xf32>
    %93 = arith.mulf %63, %92 : vector<16x32xf32>
    %94 = vector.extract_strided_slice %90 {offsets = [1, 0], sizes = [1, 32], strides = [1, 1]} : vector<2x32xf32> to vector<1x32xf32>
    %95 = vector.broadcast %94 : vector<1x32xf32> to vector<16x32xf32>
    %96 = arith.addf %93, %95 : vector<16x32xf32>
    %cst_40 = arith.constant 0.000000e+00 : f32
    %97 = vector.broadcast %cst_40 : f32 to vector<16x32xf32>
    %98 = arith.maximumf %96, %97 : vector<16x32xf32>
    %c0_41 = arith.constant 0 : index
    %c0_42 = arith.constant 0 : index
    %99 = vector.load %arg3[%c0_41, %c0_42] : memref<32x128xf32, #tpu.memory_space<vmem>>, vector<32x128xf32>
    %cst_43 = arith.constant dense<0.000000e+00> : vector<16x128xf32>
    %100 = tpu.matmul %98, %99, %cst_43 {dimension_numbers = #tpu.dot_dimension_numbers<[1], [0], [0], [1], [0, 0, 1, 1], [], []>} : vector<16x32xf32>, vector<32x128xf32>, vector<16x128xf32> -> vector<16x128xf32>
    %cst_44 = arith.constant dense<0.000000e+00> : vector<128xf32>
    %101 = vector.multi_reduction <add>, %100, %cst_44 [0] : vector<16x128xf32> to vector<128xf32>
    %102 = vector.shape_cast %101 : vector<128xf32> to vector<1x128xf32>
    %103 = arith.mulf %100, %100 : vector<16x128xf32>
    %cst_45 = arith.constant dense<0.000000e+00> : vector<128xf32>
    %104 = vector.multi_reduction <add>, %103, %cst_45 [0] : vector<16x128xf32> to vector<128xf32>
    %105 = vector.shape_cast %104 : vector<128xf32> to vector<1x128xf32>
    %106 = tpu.concatenate %102, %105 in 0 : vector<1x128xf32>, vector<1x128xf32> -> vector<2x128xf32>
    %cst_46 = arith.constant dense<0.000000e+00> : vector<2x4xf32>
    %107 = tpu.matmul %106, %13, %cst_46 {dimension_numbers = #tpu.dot_dimension_numbers<[1], [0], [0], [1], [0, 0, 1, 1], [], []>} : vector<2x128xf32>, vector<128x4xf32>, vector<2x4xf32> -> vector<2x4xf32>
    %108 = vector.extract_strided_slice %107 {offsets = [0, 0], sizes = [1, 4], strides = [1, 1]} : vector<2x4xf32> to vector<1x4xf32>
    %cst_47 = arith.constant 5.120000e+02 : f32
    %109 = vector.broadcast %cst_47 : f32 to vector<1x4xf32>
    %110 = arith.divf %108, %109 : vector<1x4xf32>
    %111 = vector.extract_strided_slice %107 {offsets = [1, 0], sizes = [1, 4], strides = [1, 1]} : vector<2x4xf32> to vector<1x4xf32>
    %cst_48 = arith.constant 5.120000e+02 : f32
    %112 = vector.broadcast %cst_48 : f32 to vector<1x4xf32>
    %113 = arith.divf %111, %112 : vector<1x4xf32>
    %114 = arith.mulf %110, %110 : vector<1x4xf32>
    %115 = arith.subf %113, %114 : vector<1x4xf32>
    %cst_49 = arith.constant 0.000000e+00 : f32
    %116 = vector.broadcast %cst_49 : f32 to vector<1x4xf32>
    %117 = arith.maximumf %115, %116 : vector<1x4xf32>
    %cst_50 = arith.constant 9.99999974E-6 : f32
    %118 = vector.broadcast %cst_50 : f32 to vector<1x4xf32>
    %119 = arith.addf %117, %118 : vector<1x4xf32>
    %120 = math.rsqrt %119 : vector<1x4xf32>
    %121 = arith.mulf %6, %120 : vector<1x4xf32>
    %122 = arith.mulf %110, %121 : vector<1x4xf32>
    %123 = arith.subf %7, %122 : vector<1x4xf32>
    %124 = tpu.concatenate %121, %123 in 0 : vector<1x4xf32>, vector<1x4xf32> -> vector<2x4xf32>
    %cst_51 = arith.constant dense<0.000000e+00> : vector<2x128xf32>
    %125 = tpu.matmul %124, %14, %cst_51 {dimension_numbers = #tpu.dot_dimension_numbers<[1], [0], [0], [1], [0, 0, 1, 1], [], []>} : vector<2x4xf32>, vector<4x128xf32>, vector<2x128xf32> -> vector<2x128xf32>
    %126 = vector.extract_strided_slice %125 {offsets = [0, 0], sizes = [1, 128], strides = [1, 1]} : vector<2x128xf32> to vector<1x128xf32>
    %127 = vector.broadcast %126 : vector<1x128xf32> to vector<16x128xf32>
    %128 = arith.mulf %100, %127 : vector<16x128xf32>
    %129 = vector.extract_strided_slice %125 {offsets = [1, 0], sizes = [1, 128], strides = [1, 1]} : vector<2x128xf32> to vector<1x128xf32>
    %130 = vector.broadcast %129 : vector<1x128xf32> to vector<16x128xf32>
    %131 = arith.addf %128, %130 : vector<16x128xf32>
    %cst_52 = arith.constant 0.000000e+00 : f32
    %132 = vector.broadcast %cst_52 : f32 to vector<16x128xf32>
    %133 = arith.maximumf %131, %132 : vector<16x128xf32>
    %c0_53 = arith.constant 0 : index
    %c0_54 = arith.constant 0 : index
    %134 = vector.load %arg4[%c0_53, %c0_54] : memref<192x128xf32, #tpu.memory_space<vmem>>, vector<192x128xf32>
    %cst_55 = arith.constant 0.000000e+00 : f32
    %135 = vector.broadcast %cst_55 : f32 to vector<1x64xf32>
    %136 = vector.extract_strided_slice %0 {offsets = [0, 0], sizes = [15, 64], strides = [1, 1]} : vector<16x64xf32> to vector<15x64xf32>
    %137 = tpu.concatenate %135, %136 in 0 : vector<1x64xf32>, vector<15x64xf32> -> vector<16x64xf32>
    %138 = vector.broadcast %11 : vector<16x1xf32> to vector<16x64xf32>
    %139 = arith.mulf %137, %138 : vector<16x64xf32>
    %140 = vector.extract_strided_slice %0 {offsets = [1, 0], sizes = [15, 64], strides = [1, 1]} : vector<16x64xf32> to vector<15x64xf32>
    %141 = tpu.concatenate %140, %135 in 0 : vector<15x64xf32>, vector<1x64xf32> -> vector<16x64xf32>
    %142 = vector.broadcast %12 : vector<16x1xf32> to vector<16x64xf32>
    %143 = arith.mulf %141, %142 : vector<16x64xf32>
    %144 = tpu.concatenate %139, %0, %143 in 1 : vector<16x64xf32>, vector<16x64xf32>, vector<16x64xf32> -> vector<16x192xf32>
    %cst_56 = arith.constant dense<0.000000e+00> : vector<16x128xf32>
    %145 = tpu.matmul %144, %134, %cst_56 {dimension_numbers = #tpu.dot_dimension_numbers<[1], [0], [0], [1], [0, 0, 1, 1], [], []>} : vector<16x192xf32>, vector<192x128xf32>, vector<16x128xf32> -> vector<16x128xf32>
    %cst_57 = arith.constant dense<0.000000e+00> : vector<128xf32>
    %146 = vector.multi_reduction <add>, %145, %cst_57 [0] : vector<16x128xf32> to vector<128xf32>
    %147 = vector.shape_cast %146 : vector<128xf32> to vector<1x128xf32>
    %148 = arith.mulf %145, %145 : vector<16x128xf32>
    %cst_58 = arith.constant dense<0.000000e+00> : vector<128xf32>
    %149 = vector.multi_reduction <add>, %148, %cst_58 [0] : vector<16x128xf32> to vector<128xf32>
    %150 = vector.shape_cast %149 : vector<128xf32> to vector<1x128xf32>
    %151 = tpu.concatenate %147, %150 in 0 : vector<1x128xf32>, vector<1x128xf32> -> vector<2x128xf32>
    %cst_59 = arith.constant dense<0.000000e+00> : vector<2x4xf32>
    %152 = tpu.matmul %151, %13, %cst_59 {dimension_numbers = #tpu.dot_dimension_numbers<[1], [0], [0], [1], [0, 0, 1, 1], [], []>} : vector<2x128xf32>, vector<128x4xf32>, vector<2x4xf32> -> vector<2x4xf32>
    %153 = vector.extract_strided_slice %152 {offsets = [0, 0], sizes = [1, 4], strides = [1, 1]} : vector<2x4xf32> to vector<1x4xf32>
    %cst_60 = arith.constant 5.120000e+02 : f32
    %154 = vector.broadcast %cst_60 : f32 to vector<1x4xf32>
    %155 = arith.divf %153, %154 : vector<1x4xf32>
    %156 = vector.extract_strided_slice %152 {offsets = [1, 0], sizes = [1, 4], strides = [1, 1]} : vector<2x4xf32> to vector<1x4xf32>
    %cst_61 = arith.constant 5.120000e+02 : f32
    %157 = vector.broadcast %cst_61 : f32 to vector<1x4xf32>
    %158 = arith.divf %156, %157 : vector<1x4xf32>
    %159 = arith.mulf %155, %155 : vector<1x4xf32>
    %160 = arith.subf %158, %159 : vector<1x4xf32>
    %cst_62 = arith.constant 0.000000e+00 : f32
    %161 = vector.broadcast %cst_62 : f32 to vector<1x4xf32>
    %162 = arith.maximumf %160, %161 : vector<1x4xf32>
    %cst_63 = arith.constant 9.99999974E-6 : f32
    %163 = vector.broadcast %cst_63 : f32 to vector<1x4xf32>
    %164 = arith.addf %162, %163 : vector<1x4xf32>
    %165 = math.rsqrt %164 : vector<1x4xf32>
    %166 = arith.mulf %8, %165 : vector<1x4xf32>
    %167 = arith.mulf %155, %166 : vector<1x4xf32>
    %168 = arith.subf %9, %167 : vector<1x4xf32>
    %169 = tpu.concatenate %166, %168 in 0 : vector<1x4xf32>, vector<1x4xf32> -> vector<2x4xf32>
    %cst_64 = arith.constant dense<0.000000e+00> : vector<2x128xf32>
    %170 = tpu.matmul %169, %14, %cst_64 {dimension_numbers = #tpu.dot_dimension_numbers<[1], [0], [0], [1], [0, 0, 1, 1], [], []>} : vector<2x4xf32>, vector<4x128xf32>, vector<2x128xf32> -> vector<2x128xf32>
    %171 = vector.extract_strided_slice %170 {offsets = [0, 0], sizes = [1, 128], strides = [1, 1]} : vector<2x128xf32> to vector<1x128xf32>
    %172 = vector.broadcast %171 : vector<1x128xf32> to vector<16x128xf32>
    %173 = arith.mulf %145, %172 : vector<16x128xf32>
    %174 = vector.extract_strided_slice %170 {offsets = [1, 0], sizes = [1, 128], strides = [1, 1]} : vector<2x128xf32> to vector<1x128xf32>
    %175 = vector.broadcast %174 : vector<1x128xf32> to vector<16x128xf32>
    %176 = arith.addf %173, %175 : vector<16x128xf32>
    %cst_65 = arith.constant 0.000000e+00 : f32
    %177 = vector.broadcast %cst_65 : f32 to vector<16x128xf32>
    %178 = arith.maximumf %176, %177 : vector<16x128xf32>
    %179 = arith.addf %133, %178 : vector<16x128xf32>
    %c0_66 = arith.constant 0 : index
    %c0_67 = arith.constant 0 : index
    %180 = vector.load %arg11[%c0_66, %c0_67] : memref<16x128xf32, #tpu.memory_space<vmem>>, vector<16x128xf32>
    tpu.vector_store %arg11[%c0_66, %c0_67], %179 {strides = array<i32>} : memref<16x128xf32, #tpu.memory_space<vmem>>, vector<16x128xf32>,
    return
  }
}

</mosaic_0001>

<bundles_post_ra>
// kernel: tpu_custom_call.1
= control target key start
LH: loop header
LB: loop body
LE: loop exit
PB: predicated region body
PF: predicated region fallthrough
CT: control target
= control target key end

     0   :  { %vm69_vm0 = vcmask 523264   ;;  %s2242_s0 = inlined_call_operand.vmem [shape: f32[16,64], index: 0, kind: input, shape index: {}]   ;;  %s2243_s1 = inlined_call_operand.vmem [shape: f32[64,32], index: 1, kind: input, shape index: {}]   ;;  %s2244_s2 = inlined_call_operand.vmem [shape: f32[96,32], index: 2, kind: input, shape index: {}]   ;;  %s2245_s3 = inlined_call_operand.vmem [shape: f32[32,128], index: 3, kind: input, shape index: {}]   ;;  %s2246_s4 = inlined_call_operand.vmem [shape: f32[192,128], index: 4, kind: input, shape index: {}]   ;;  %s2247_s5 = inlined_call_operand.vmem [shape: f32[2,10], index: 5, kind: input, shape index: {}]   ;;  %s2248_s6 = inlined_call_operand.vmem [shape: f32[16,2], index: 6, kind: input, shape index: {}]   ;;  %s2249_s7 = inlined_call_operand.vmem [shape: f32[32,1], index: 7, kind: input, shape index: {}]   ;;  %s2250_s8 = inlined_call_operand.vmem [shape: f32[1,32], index: 8, kind: input, shape index: {}]   ;;  %s2251_s9 = inlined_call_operand.vmem [shape: f32[128,4], index: 9, kind: input, shape index: {}]   ;;  %s2252_s10 = inlined_call_operand.vmem [shape: f32[4,128], index: 10, kind: input, shape index: {}]   ;;  %s2253_s11 = inlined_call_operand.hbm [shape: f32[16,128], index: 11, kind: output, shape index: {}]  }
   0x1   :  { %v68_v0 = vld [vmem:[%s2243_s1 + $0x38] sm:$0xff]  ;;  %v67_v1 = vld [vmem:[%s2243_s1 + $0x30] sm:$0xff]  ;;  %v66_v2 = vld [vmem:[%s2243_s1 + $0x28] sm:$0xff] }
   0x2   :  { %1467 = vmatprep.subr.mxu0 %v68_v0  ;;  %v1770_v3 = vld [vmem:[%s2242_s0] sm:$0xff] }
   0x3   :  { %1468 = vmatpush3.msra.mxu0 %v68_v0  ;;  %1483 = vmatprep.mubr.msk.f32.mxu0 %vm69_vm0, %v1770_v3 }
   0x4   :  { %1469 = vmatprep.subr.mxu0 %v67_v1 }
   0x5   :  { %16 = vsyncpa [#allocation3], 0  ;;  %1470 = vmatpush3.msra.mxu0 %v67_v1  ;;  %v65_v4 = vld [vmem:[%s2243_s1 + $0x20] sm:$0xff]  ;;  %v64_v5 = vld [vmem:[%s2243_s1 + $0x18] sm:$0xff]  ;;  %v1683_v11 = vmov 0.0   ;;  %vm1684_vm1 = vmmov 0  }
   0x6   :  { %1471 = vmatprep.subr.mxu0 %v66_v2  ;;  %v63_v6 = vld [vmem:[%s2243_s1 + $0x10] sm:$0xff]  ;;  %v62_v7 = vld [vmem:[%s2243_s1 + $0x8] sm:$0xff]  ;;  %v61_v8 = vld [vmem:[%s2243_s1] sm:$0xff]  ;;  %1486 = vmatprep.subr.mxu1 %v1683_v11  ;;  %vm156_vm2 = vcmask 261120   ;;  %vm177_vm3 = vcmask 1040384   ;;  %v1685_v40 = vmov 1  }
   0x7   :  { %1472 = vmatpush3.msra.mxu0 %v66_v2  ;;  %v1792_v9 = vld [vmem:[%s2242_s0 + $0x8] sm:$0xff]  ;;  %v154_v10 = vld [vmem:[%s2249_s7 + $0x18] sm:$0xff]  ;;  %v153_v12 = vld [vmem:[%s2249_s7 + $0x10] sm:$0xff]  ;;  %1494 = vmatprep.mubr.msk.f32.mxu1 %vm1684_vm1, %v1683_v11  ;;  %v1686_v41 = vmov 0   ;;  %vm272_vm4 = vcmask 7168   ;;  %vm395_vm5 = vcmask 1046528  }
   0x8   :  { %1473 = vmatprep.subr.mxu0 %v65_v4  ;;  %1487 = vmatpush3.msra.mxu1 %v154_v10  ;;  %v152_v13 = vld [vmem:[%s2249_s7 + $0x8] sm:$0xff]  ;;  %v151_v14 = vld [vmem:[%s2249_s7] sm:$0xff]  ;;  %v374_v59 = vld [vmem:[%s2244_s2 + $0x58] sm:$0xff]  ;;  %s1688_s29 = smov 64   ;;  %vm430_vm6 = vcmask 785408   ;;  %s1690_s30 = smov 127  }
   0x9   :  { %1474 = vmatpush3.msra.mxu0 %v65_v4  ;;  %1488 = vmatprep.subr.mxu1 %v1683_v11  ;;  %v1843_v38 = vld [vmem:[%s2250_s8] sm:$0x1]  ;;  %v43_v42 = vld [vmem:[%s2248_s6 + $0x8] sm:$0xff]  ;;  %v373_v60 = vld [vmem:[%s2244_s2 + $0x50] sm:$0xff]  ;;  %s1692_s22 = smov 126   ;;  %vm927_vm7 = vcmask 1043456  }
   0xa   :  { %1475 = vmatprep.subr.mxu0 %v64_v5  ;;  %1489 = vmatpush3.msra.mxu1 %v153_v12  ;;  %v42_v39 = vld [vmem:[%s2248_s6] sm:$0xff]  ;;  %v372_v61 = vld [vmem:[%s2244_s2 + $0x48] sm:$0xff]  ;;  %v370_v63 = vld [vmem:[%s2244_s2 + $0x38] sm:$0xff]  ;;  %s1689_s6 = smov 1   ;;  %vm924_vm8 = vcmask 31744   ;;  %s1694_s19 = smov 122  }
   0xb   :  { %1476 = vmatpush3.msra.mxu0 %v64_v5  ;;  %1490 = vmatprep.subr.mxu1 %v1683_v11  ;;  %v1856_v52 = vld [vmem:[%s2247_s5] sm:$0x3]  ;;  %v369_v0 = vld [vmem:[%s2244_s2 + $0x30] sm:$0xff]  ;;  %v368_v1 = vld [vmem:[%s2244_s2 + $0x28] sm:$0xff]  ;;  %v349_v5 = vlaneseq }
   0xc   :  { %1477 = vmatprep.subr.mxu0 %v63_v6  ;;  %1491 = vmatpush3.msra.mxu1 %v152_v13  ;;  %v371_v62 = vld [vmem:[%s2244_s2 + $0x40] sm:$0xff]  ;;  %v366_v4 = vld [vmem:[%s2244_s2 + $0x18] sm:$0xff] }
   0xd   :  { %1478 = vmatpush3.msra.mxu0 %v63_v6  ;;  %1492 = vmatprep.subr.mxu1 %v1683_v11  ;;  %v367_v2 = vld [vmem:[%s2244_s2 + $0x20] sm:$0xff]  ;;  %v350_v6 = vshrl.u32 %v349_v5, 7 }
   0xe   :  { %1479 = vmatprep.subr.mxu0 %v62_v7  ;;  %1493 = vmatpush3.msra.mxu1 %v151_v14 }
   0xf   :  { %1480 = vmatpush3.msra.mxu0 %v62_v7  ;;  %1497 = vmatprep.subr.mxu1 %v1683_v11  ;;  %v365_v7 = vld [vmem:[%s2244_s2 + $0x10] sm:$0xff] }
  0x10   :  { %1481 = vmatprep.subr.mxu0 %v61_v8  ;;  %1651 = vset.pattern.permute.xlu0 %v1685_v40 }
  0x11   :  { %1482 = vmatpush3.msra.mxu0 %v61_v8  ;;  %1652 = vset.pattern.permute.xlu1 %v1686_v41  ;;  %v364_v8 = vld [vmem:[%s2244_s2 + $0x8] sm:$0xff] }
  0x12   :  { %1484 = vmatmul.mubr.msk.f32.vlgmr.msra.gmra.mxu0 %vm69_vm0, %v1792_v9  ;;  %1529 = vmatprep.subr.mxu0 %v1683_v11 }
  0x13   :  { %1530 = vmatpush3.msra.mxu0 %v154_v10  ;;  %1537 = vmatprep.mubr.msk.f32.mxu0 %vm1684_vm1, %v1683_v11  ;;  %v1895_v10 = vsub.s32 0, %v350_v6 }
  0x14   :  { %1531 = vmatprep.subr.mxu0 %v1683_v11  ;;  %403 = vperm.xlu0 %1651, %v42_v39  }
  0x15   :  { %1532 = vmatpush3.msra.mxu0 %v153_v12  ;;  %385 = vperm.xlu1 %1652, %v42_v39   ;;  %v1897_v12 = vsub.s32 1, %v350_v6 }
  0x16   :  { %1533 = vmatprep.subr.mxu0 %v1683_v11 }
  0x17   :  { %1534 = vmatpush3.msra.mxu0 %v152_v13 }
  0x18   :  { %1535 = vmatprep.subr.mxu0 %v1683_v11  ;;  %407 = vperm.xlu0 %1651, %v43_v42  }
  0x19   :  { %1536 = vmatpush3.msra.mxu0 %v151_v14  ;;  %390 = vperm.xlu1 %1652, %v43_v42   ;;  %v363_v14 = vld [vmem:[%s2244_s2] sm:$0xff]  ;;  %s1687_s2 = smov 32  }
  0x1a   :  { %1540 = vmatprep.subr.mxu0 %v1683_v11 }
  0xd2   :  { %v1822_v15 = vpop.f32.mrf.mxu0 }
  0xd3   :  { %v167_v16 = vmul.f32 %v1822_v15, %v1822_v15  ;;  %v158_v18 = vsel %vm156_vm2, %v1822_v15, 0.0 }
  0xd4   :  { %v1826_v17 = vpop.f32.mrf.mxu0 }
  0xd5   :  { %v157_v19 = vsel %vm156_vm2, %v1826_v17, 0.0  ;;  %v166_v20 = vmul.f32 %v1826_v17, %v1826_v17  ;;  %v169_v22 = vsel %vm156_vm2, %v167_v16, 0.0 }
  0xd6   :  { %v159_v21 = vadd.f32 %v158_v18, %v157_v19 }
  0xd7   :  { %v168_v23 = vsel %vm156_vm2, %v166_v20, 0.0 }
  0xd8   :  { %v160_v24 = vrot.slane %v159_v21, 4  ;;  %v170_v25 = vadd.f32 %v169_v22, %v168_v23 }
  0xda   :  { %v161_v26 = vadd.f32 %v160_v24, %v159_v21  ;;  %v171_v27 = vrot.slane %v170_v25, 4  ;;  %v1907_v24 = vpop.permute.xlu0 %403 }
  0xdc   :  { %v162_v28 = vrot.slane %v161_v26, 2  ;;  %v172_v29 = vadd.f32 %v171_v27, %v170_v25 }
  0xde   :  { %v163_v30 = vadd.f32 %v162_v28, %v161_v26  ;;  %v173_v31 = vrot.slane %v172_v29, 2 }
  0xe0   :  { %v164_v32 = vrot.slane %v163_v30, 1  ;;  %v174_v33 = vadd.f32 %v173_v31, %v172_v29 }
  0xe2   :  { %v175_v34 = vrot.slane %v174_v33, 1  ;;  %v165_v35 = vadd.f32 %v164_v32, %v163_v30 }
  0xe4   :  { %v176_v36 = vadd.f32 %v175_v34, %v174_v33 }
  0xe6   :  { %v178_v37 = vsel %vm177_vm3, %v165_v35, %v176_v36  ;;  %v1918_v35 = vpop.permute.xlu1 %385 }
  0xe7   :  { %1495 = vmatmul.mubr.msk.f32.vlgmr.msra.gmra.mxu1 %vm156_vm2, %v178_v37 }
  0xe8   :  { %1499 = vmatprep.mubr.msk.f32.mxu1 %vm1684_vm1, %v1683_v11  ;;  %1498 = vmatpush3.msk.msra.mxu1 %vm177_vm3, %v1843_v38 }
  0xe9   :  { %1502 = vmatprep.subr.mxu1 %v374_v59 }
  0xea   :  { %v1920_v36 = vpop.permute.xlu1 %390 }
 0x1a7   :  { %v248_v43 = vpop.f32.mrf.mxu1 }
 0x1a8   :  { %v253_v44 = vmul.f32 0.001953125, %v248_v43 }
 0x1a9   :  { %v1496_v45 = vpop.f32.mrf.mxu1 }
 0x1aa   :  { %v254_v46 = vmul.f32 %v253_v44, %v253_v44 }
 0x1ac   :  { %v256_v47 = vrot.slane %v254_v46, 7 }
 0x1ae   :  { %v258_v48 = vsub.f32 %v253_v44, %v256_v47 }
 0x1b0   :  { %v259_v49 = vmax.f32 %v258_v48, 0.0 }
 0x1b2   :  { %v260_v50 = vadd.f32 1e-05, %v259_v49 }
 0x1b4   :  { %1653 = vrsqrt.f32 %v260_v50 }
 0x1c1   :  { %v1654_v51 = vpop.eup %1653 }
 0x1c2   :  { %v263_v53 = vrot.slane %v1654_v51, 1 }
 0x1c4   :  { %v265_v54 = vmul.f32 %v263_v53, %v1856_v52 }
 0x1c6   :  { %v266_v55 = vmul.f32 %v265_v54, %v253_v44 }
 0x1c8   :  { %v268_v56 = vrot.slane %v266_v55, 7 }
 0x1ca   :  { %v270_v57 = vsub.f32 %v1856_v52, %v268_v56 }
 0x1cc   :  { %v271_v58 = vsel %vm177_vm3, %v265_v54, %v270_v57 }
 0x1cd   :  { %1500 = vmatmul.mubr.msk.f32.vlgmr.msra.gmra.mxu1 %vm272_vm4, %v271_v58 }
 0x1ce   :  { %1503 = vmatpush3.msra.mxu1 %v374_v59 }
 0x1cf   :  { %1504 = vmatprep.subr.mxu1 %v373_v60 }
 0x1d0   :  { %1505 = vmatpush3.msra.mxu1 %v373_v60 }
 0x1d1   :  { %1506 = vmatprep.subr.mxu1 %v372_v61 }
 0x1d2   :  { %1507 = vmatpush3.msra.mxu1 %v372_v61 }
 0x1d3   :  { %1508 = vmatprep.subr.mxu1 %v371_v62 }
 0x1d4   :  { %1509 = vmatpush3.msra.mxu1 %v371_v62 }
 0x1d5   :  { %1510 = vmatprep.subr.mxu1 %v370_v63 }
 0x1d6   :  { %1511 = vmatpush3.msra.mxu1 %v370_v63 }
 0x1d7   :  { %1512 = vmatprep.subr.mxu1 %v369_v0 }
 0x1d8   :  { %1513 = vmatpush3.msra.mxu1 %v369_v0 }
 0x1d9   :  { %1514 = vmatprep.subr.mxu1 %v368_v1 }
 0x1da   :  { %1515 = vmatpush3.msra.mxu1 %v368_v1 }
 0x1db   :  { %1516 = vmatprep.subr.mxu1 %v367_v2 }
 0x1dc   :  { %1517 = vmatpush3.msra.mxu1 %v367_v2 }
 0x1dd   :  { %1518 = vmatprep.subr.mxu1 %v366_v4 }
 0x1de   :  { %1519 = vmatpush3.msra.mxu1 %v366_v4 }
 0x1df   :  { %1520 = vmatprep.subr.mxu1 %v365_v7 }
 0x1e0   :  { %1521 = vmatpush3.msra.mxu1 %v365_v7 }
 0x1e1   :  { %1522 = vmatprep.subr.mxu1 %v364_v8 }
 0x1e2   :  { %1523 = vmatpush3.msra.mxu1 %v364_v8 }
 0x1e3   :  { %1524 = vmatprep.subr.mxu1 %v363_v14 }
 0x1e4   :  { %1525 = vmatpush3.msra.mxu1 %v363_v14 }
 0x1e5   :  { %1591 = vmatprep.subr.mxu1 %v1683_v11 }
 0x28d   :  { %v345_v13 = vpop.f32.mrf.mxu1 }
 0x28e   :  { %v352_v16 = vrot.slane %v345_v13, %v1895_v10  ;;  %v358_v21 = vrot.slane %v345_v13, %v1897_v12 }
 0x28f   :  { %v1501_v18 = vpop.f32.mrf.mxu1 }
 0x290   :  { %v353_v19 = vmul.f32 %v352_v16, %v1826_v17  ;;  %v354_v20 = vmul.f32 %v1822_v15, %v352_v16  ;;  %v1910_v17 = vpop.permute.xlu0 %407 }
 0x292   :  { %v359_v22 = vadd.f32 %v358_v21, %v353_v19  ;;  %v360_v23 = vadd.f32 %v358_v21, %v354_v20 }
 0x294   :  { %v361_v25 = vmax.f32 %v359_v22, 0.0  ;;  %v362_v26 = vmax.f32 %v360_v23, 0.0 }
 0x296   :  { %v396_v27 = vrot.slane %v361_v25, 1  ;;  %v397_v28 = vrot.slane %v362_v26, 1  ;;  %v377_v29 = vrot.slane %v361_v25, 7  ;;  %414 = vrot.lane.b32.xlu1 %v362_v26, %s1687_s2  ;;  %412 = vrot.lane.b32.xlu0 %v361_v25, %s1687_s2  ;;  %v378_v30 = vrot.slane %v362_v26, 7 }
 0x298   :  { %v398_v15 = vsel %vm395_vm5, %v396_v27, %v397_v28  ;;  %v401_v31 = vsel %vm395_vm5, %v397_v28, 0.0  ;;  %v379_v32 = vsel %vm177_vm3, %v377_v29, %v378_v30  ;;  %v382_v37 = vsel %vm177_vm3, 0.0, %v377_v29 }
 0x299   :  { %v410_v33 = vmul.f32 %v1907_v24, %v398_v15  ;;  %v411_v34 = vmul.f32 %v1910_v17, %v401_v31  ;;  %v393_v41 = vmul.f32 %v1918_v35, %v382_v37  ;;  %v394_v42 = vmul.f32 %v1920_v36, %v379_v32  ;;  %v724_v37 = vld [vmem:[%s2245_s3 + $0x10] sm:$0xff] }
 0x29b   :  { %422 = vrot.lane.b32.xlu1 %v411_v34, %s1688_s29  ;;  %420 = vrot.lane.b32.xlu0 %v410_v33, %s1688_s29  ;;  %v725_v34 = vld [vmem:[%s2245_s3 + $0x18] sm:$0xff] }
 0x308   :  { %v415_v39 = vpop.permute.xlu1 %414  ;;  %v413_v40 = vpop.permute.xlu0 %412 }
 0x309   :  { %v427_v43 = vsel %vm156_vm2, %v394_v42, %v415_v39  ;;  %v426_v44 = vsel %vm156_vm2, %v393_v41, %v413_v40  ;;  %v723_v39 = vld [vmem:[%s2245_s3 + $0x8] sm:$0xff]  ;;  %v722_v40 = vld [vmem:[%s2245_s3] sm:$0xff]  ;;  %s1695_s3 = smov [#allocation2]  }
 0x30a   :  { %s1356_s1 = sshll.u32 %s1695_s3, 4  ;;  %s1357_s1 = int_to_ptr.vmem [resolvable:$true] %s1356_s1 }
 0x30b   :  { %s1661_s20 = scalar_lea.vmem %s1357_s1, 256  ;;  %p1666_p1 = scmp.lt.s32.totalorder %s1357_s1, %s1357_s1 }
 0x30c   :  { %p1662_p0 = scmp.ne.s32.totalorder %s1357_s1, %s1661_s20  ;;  %p1667_p2 = scmp.lt.s32.totalorder %s1661_s20, %s1661_s20 }
 0x30d   :  { %v423_v45 = vpop.permute.xlu1 %422  ;;  %v421_v46 = vpop.permute.xlu0 %420 }
 0x30e   :  { %v429_v47 = vsel %vm69_vm0, %v427_v43, %v423_v45  ;;  %v428_v48 = vsel %vm69_vm0, %v426_v44, %v421_v46  ;;  %p1668_p3 = por %p1667_p2, %p1666_p1 }
 0x30f   :  { %1526 = vmatprep.mubr.msk.f32.mxu1 %vm430_vm6, %v428_v48 }
 0x310   :  { %1527 = vmatmul.mubr.msk.f32.vlgmr.msra.gmra.mxu1 %vm430_vm6, %v429_v47  ;;  %p1669_p4 = pnand %p1668_p3, %p1662_p0 }
 0x311   :  { %1593 = vmatprep.mubr.msk.f32.mxu1 %vm1684_vm1, %v1683_v11 }
 0x3d0   :  { %v1931_v49 = vpop.f32.mrf.mxu1 }
 0x3d1   :  { %v522_v50 = vmul.f32 %v1931_v49, %v1931_v49  ;;  %v513_v53 = vsel %vm156_vm2, %v1931_v49, 0.0 }
 0x3d2   :  { %v1935_v51 = vpop.f32.mrf.mxu1 }
 0x3d3   :  { %v512_v54 = vsel %vm156_vm2, %v1935_v51, 0.0  ;;  %v521_v55 = vmul.f32 %v1935_v51, %v1935_v51  ;;  %v524_v57 = vsel %vm156_vm2, %v522_v50, 0.0 }
 0x3d4   :  { %v514_v56 = vadd.f32 %v513_v53, %v512_v54  ;;  %v1975_v54 = vld [vmem:[%s2251_s9 + $0x78] sm:$0xff] }
 0x3d5   :  { %v523_v58 = vsel %vm156_vm2, %v521_v55, 0.0  ;;  %v1998_v55 = vld [vmem:[%s2251_s9 + $0x60] sm:$0xff] }
 0x3d6   :  { %v515_v59 = vrot.slane %v514_v56, 4  ;;  %v525_v60 = vadd.f32 %v524_v57, %v523_v58  ;;  %v2012_v57 = vld [vmem:[%s2251_s9 + $0x50] sm:$0xff]  ;;  %v53_v58 = vld [vmem:[%s2251_s9 + $0x48] sm:$0xff] }
 0x3d8   :  { %v516_v61 = vadd.f32 %v515_v59, %v514_v56  ;;  %v526_v62 = vrot.slane %v525_v60, 4  ;;  %v2005_v56 = vld [vmem:[%s2251_s9 + $0x58] sm:$0xff]  ;;  %v52_v59 = vld [vmem:[%s2251_s9 + $0x40] sm:$0xff] }
 0x3da   :  { %v517_v63 = vrot.slane %v516_v61, 2  ;;  %v527_v0 = vadd.f32 %v526_v62, %v525_v60  ;;  %v51_v60 = vld [vmem:[%s2251_s9 + $0x38] sm:$0xff]  ;;  %v49_v62 = vld [vmem:[%s2251_s9 + $0x28] sm:$0xff] }
 0x3dc   :  { %v518_v1 = vadd.f32 %v517_v63, %v516_v61  ;;  %v528_v2 = vrot.slane %v527_v0, 2  ;;  %v50_v61 = vld [vmem:[%s2251_s9 + $0x30] sm:$0xff]  ;;  %v48_v63 = vld [vmem:[%s2251_s9 + $0x20] sm:$0xff] }
 0x3de   :  { %v519_v4 = vrot.slane %v518_v1, 1  ;;  %v529_v5 = vadd.f32 %v528_v2, %v527_v0  ;;  %v47_v0 = vld [vmem:[%s2251_s9 + $0x18] sm:$0xff]  ;;  %v45_v2 = vld [vmem:[%s2251_s9 + $0x8] sm:$0xff] }
 0x3e0   :  { %v530_v6 = vrot.slane %v529_v5, 1  ;;  %v520_v7 = vadd.f32 %v519_v4, %v518_v1  ;;  %v46_v1 = vld [vmem:[%s2251_s9 + $0x10] sm:$0xff]  ;;  %v44_v4 = vld [vmem:[%s2251_s9] sm:$0xff] }
 0x3e2   :  { %v531_v8 = vadd.f32 %v530_v6, %v529_v5 }
 0x3e4   :  { %v532_v13 = vsel %vm177_vm3, %v520_v7, %v531_v8 }
 0x3e5   :  { %1538 = vmatmul.mubr.msk.f32.vlgmr.msra.gmra.mxu0 %vm156_vm2, %v532_v13 }
 0x3e6   :  { %1541 = vmatpush3.msk.msra.mxu0 %vm177_vm3, %v1843_v38  ;;  %1542 = vmatprep.mubr.msk.f32.mxu0 %vm1684_vm1, %v1683_v11 }
 0x3e7   :  { %1545 = vmatprep.subr.mxu0 %v725_v34 }
 0x4a5   :  { %v602_v14 = vpop.f32.mrf.mxu0 }
 0x4a6   :  { %v606_v16 = vmul.f32 0.001953125, %v602_v14 }
 0x4a7   :  { %v1539_v18 = vpop.f32.mrf.mxu0 }
 0x4a8   :  { %v607_v19 = vmul.f32 %v606_v16, %v606_v16 }
 0x4aa   :  { %v609_v20 = vrot.slane %v607_v19, 7 }
 0x4ac   :  { %v611_v21 = vsub.f32 %v606_v16, %v609_v20 }
 0x4ae   :  { %v612_v22 = vmax.f32 %v611_v21, 0.0 }
 0x4b0   :  { %v613_v23 = vadd.f32 1e-05, %v612_v22 }
 0x4b2   :  { %1655 = vrsqrt.f32 %v613_v23 }
 0x4bf   :  { %v1656_v25 = vpop.eup %1655 }
 0x4c0   :  { %v616_v26 = vrot.slane %v1656_v25, 1 }
 0x4c2   :  { %617 = vrot.lane.b32.xlu0 %v616_v26, %s1689_s6 }
 0x534   :  { %v618_v27 = vpop.permute.xlu0 %617 }
 0x535   :  { %v620_v28 = vmul.f32 %v618_v27, %v1856_v52 }
 0x537   :  { %622 = vrot.lane.b32.xlu1 %v620_v28, %s1690_s30 }
 0x5a9   :  { %v623_v38 = vpop.permute.xlu1 %622 }
 0x5aa   :  { %v625_v29 = vmul.f32 %v623_v38, %v606_v16 }
 0x5ac   :  { %v627_v30 = vrot.slane %v625_v29, 7 }
 0x5ae   :  { %628 = vrot.lane.b32.xlu0 %v627_v30, %s1689_s6 }
 0x620   :  { %v629_v15 = vpop.permute.xlu0 %628 }
 0x621   :  { %v631_v31 = vsub.f32 %v1856_v52, %v629_v15 }
 0x623   :  { %v632_v32 = vsel %vm177_vm3, %v620_v28, %v631_v31 }
 0x624   :  { %634 = vrot.lane.b32.xlu1 %v632_v32, %s1690_s30 }
 0x696   :  { %v635_v33 = vpop.permute.xlu1 %634 }
 0x697   :  { %1543 = vmatmul.mubr.msk.f32.vlgmr.msra.gmra.mxu0 %vm272_vm4, %v635_v33 }
 0x698   :  { %1546 = vmatpush3.msra.mxu0 %v725_v34 }
 0x699   :  { %1547 = vmatprep.subr.mxu0 %v724_v37 }
 0x69a   :  { %1548 = vmatpush3.msra.mxu0 %v724_v37 }
 0x69b   :  { %1549 = vmatprep.subr.mxu0 %v723_v39 }
 0x69c   :  { %1550 = vmatpush3.msra.mxu0 %v723_v39 }
 0x69d   :  { %1551 = vmatprep.subr.mxu0 %v722_v40 }
 0x69e   :  { %1552 = vmatpush3.msra.mxu0 %v722_v40 }
 0x69f   :  { %1556 = vmatprep.subr.mxu0 %v1683_v11 }
 0x757   :  { %v704_v41 = vpop.f32.mrf.mxu0 }
 0x758   :  { %v711_v42 = vrot.slane %v704_v41, %v1895_v10  ;;  %v717_v46 = vrot.slane %v704_v41, %v1897_v12 }
 0x759   :  { %v1544_v43 = vpop.f32.mrf.mxu0 }
 0x75a   :  { %v712_v44 = vmul.f32 %v711_v42, %v1935_v51  ;;  %v713_v45 = vmul.f32 %v1931_v49, %v711_v42  ;;  %v1982_v51 = vld [vmem:[%s2251_s9 + $0x70] sm:$0xff]  ;;  %v1991_v49 = vld [vmem:[%s2251_s9 + $0x68] sm:$0xff]  ;;  %s1691_s9 = smov 2  }
 0x75c   :  { %v718_v47 = vadd.f32 %v717_v46, %v712_v44  ;;  %v719_v48 = vadd.f32 %v717_v46, %v713_v45  ;;  %v2096_v44 = vld [vmem:[%s2252_s10] sm:$0xf] }
 0x75d   :  { %1592 = vmatpush3.msk.msra.mxu1 %vm927_vm7, %v2096_v44 }
 0x75e   :  { %v720_v50 = vmax.f32 %v718_v47, 0.0  ;;  %v721_v53 = vmax.f32 %v719_v48, 0.0  ;;  %1069 = vmatprep.subr.mxu1 %v1683_v11 }
 0x760   :  { %1553 = vmatprep.mubr.msk.f32.mxu0 %vm156_vm2, %v720_v50 }
 0x761   :  { %1554 = vmatmul.mubr.msk.f32.vlgmr.msra.gmra.mxu0 %vm156_vm2, %v721_v53 }
 0x762   :  { %1557 = vmatpush3.msra.mxu0 %v1975_v54  ;;  %1588 = vmatprep.mubr.msk.f32.mxu0 %vm1684_vm1, %v1683_v11 }
 0x763   :  { %1558 = vmatprep.subr.mxu0 %v1683_v11 }
 0x764   :  { %1559 = vmatpush3.msra.mxu0 %v1982_v51 }
 0x765   :  { %1560 = vmatprep.subr.mxu0 %v1683_v11 }
 0x766   :  { %1561 = vmatpush3.msra.mxu0 %v1991_v49 }
 0x767   :  { %1562 = vmatprep.subr.mxu0 %v1683_v11 }
 0x768   :  { %1563 = vmatpush3.msra.mxu0 %v1998_v55 }
 0x769   :  { %1564 = vmatprep.subr.mxu0 %v1683_v11 }
 0x76a   :  { %1565 = vmatpush3.msra.mxu0 %v2005_v56 }
 0x76b   :  { %1566 = vmatprep.subr.mxu0 %v1683_v11 }
 0x76c   :  { %1567 = vmatpush3.msra.mxu0 %v2012_v57 }
 0x76d   :  { %1568 = vmatprep.subr.mxu0 %v1683_v11 }
 0x76e   :  { %1569 = vmatpush3.msra.mxu0 %v53_v58 }
 0x76f   :  { %1570 = vmatprep.subr.mxu0 %v1683_v11 }
 0x770   :  { %1571 = vmatpush3.msra.mxu0 %v52_v59 }
 0x771   :  { %1572 = vmatprep.subr.mxu0 %v1683_v11 }
 0x772   :  { %1573 = vmatpush3.msra.mxu0 %v51_v60 }
 0x773   :  { %1574 = vmatprep.subr.mxu0 %v1683_v11 }
 0x774   :  { %1575 = vmatpush3.msra.mxu0 %v50_v61 }
 0x775   :  { %1576 = vmatprep.subr.mxu0 %v1683_v11 }
 0x776   :  { %1577 = vmatpush3.msra.mxu0 %v49_v62 }
 0x777   :  { %1578 = vmatprep.subr.mxu0 %v1683_v11 }
 0x778   :  { %1579 = vmatpush3.msra.mxu0 %v48_v63 }
 0x779   :  { %1580 = vmatprep.subr.mxu0 %v1683_v11 }
 0x77a   :  { %1581 = vmatpush3.msra.mxu0 %v47_v0 }
 0x77b   :  { %1582 = vmatprep.subr.mxu0 %v1683_v11 }
 0x77c   :  { %1583 = vmatpush3.msra.mxu0 %v46_v1 }
 0x77d   :  { %1584 = vmatprep.subr.mxu0 %v1683_v11 }
 0x77e   :  { %1585 = vmatpush3.msra.mxu0 %v45_v2 }
 0x77f   :  { %1586 = vmatprep.subr.mxu0 %v1683_v11 }
 0x780   :  { %1587 = vmatpush3.msra.mxu0 %v44_v4 }
 0x781   :  { %1596 = vmatprep.subr.mxu0 %v1683_v11 }
 0x821   :  { %v2058_v5 = vpop.f32.mrf.mxu0 }
 0x822   :  { %v815_v7 = vmul.f32 %v2058_v5, %v2058_v5 }
 0x823   :  { %v2060_v6 = vpop.f32.mrf.mxu0 }
 0x824   :  { %v807_v8 = vadd.f32 %v2058_v5, %v2060_v6  ;;  %v814_v13 = vmul.f32 %v2060_v6, %v2060_v6 }
 0x826   :  { %v808_v14 = vrot.slane %v807_v8, 4  ;;  %v816_v16 = vadd.f32 %v815_v7, %v814_v13  ;;  %v1018_v7 = vld [vmem:[%s2246_s4 + $0x18] sm:$0xff]  ;;  %v1016_v13 = vld [vmem:[%s2246_s4 + $0x8] sm:$0xff] }
 0x828   :  { %v809_v18 = vadd.f32 %v808_v14, %v807_v8  ;;  %v817_v19 = vrot.slane %v816_v16, 4  ;;  %v1017_v8 = vld [vmem:[%s2246_s4 + $0x10] sm:$0xff]  ;;  %v1015_v14 = vld [vmem:[%s2246_s4] sm:$0xff] }
 0x82a   :  { %v810_v20 = vrot.slane %v809_v18, 2  ;;  %v818_v21 = vadd.f32 %v817_v19, %v816_v16  ;;  %v1038_v16 = vld [vmem:[%s2246_s4 + $0xb8] sm:$0xff]  ;;  %v1036_v19 = vld [vmem:[%s2246_s4 + $0xa8] sm:$0xff] }
 0x82c   :  { %v811_v22 = vadd.f32 %v810_v20, %v809_v18  ;;  %v819_v23 = vrot.slane %v818_v21, 2  ;;  %v1037_v18 = vld [vmem:[%s2246_s4 + $0xb0] sm:$0xff]  ;;  %v1035_v20 = vld [vmem:[%s2246_s4 + $0xa0] sm:$0xff] }
 0x82e   :  { %v812_v25 = vrot.slane %v811_v22, 1  ;;  %v820_v26 = vadd.f32 %v819_v23, %v818_v21  ;;  %v1039_v21 = vrot.slane %v1770_v3, 7  ;;  %v1033_v23 = vld [vmem:[%s2246_s4 + $0x90] sm:$0xff] }
 0x830   :  { %v821_v27 = vrot.slane %v820_v26, 1  ;;  %v813_v28 = vadd.f32 %v812_v25, %v811_v22  ;;  %v1034_v22 = vld [vmem:[%s2246_s4 + $0x98] sm:$0xff]  ;;  %v1044_v25 = vsel %vm177_vm3, 0.0, %v1039_v21 }
 0x832   :  { %v822_v38 = vadd.f32 %v821_v27, %v820_v26  ;;  %v1040_v26 = vrot.slane %v1792_v9, 7 }
 0x834   :  { %v823_v29 = vsel %vm177_vm3, %v813_v28, %v822_v38  ;;  %v1031_v38 = vld [vmem:[%s2246_s4 + $0x80] sm:$0xff] }
 0x835   :  { %1589 = vmatmul.mubr.f32.vlgmr.msra.gmra.mxu0 %v823_v29  ;;  %v1045_v29 = vmul.f32 %v1044_v25, %v1918_v35 }
 0x836   :  { %1597 = vmatpush3.msra.mxu0 %v1975_v54  ;;  %1628 = vmatprep.mubr.msk.f32.mxu0 %vm1684_vm1, %v1683_v11  ;;  %v1047_v54 = vrot.slane %v1770_v3, 1 }
 0x837   :  { %1598 = vmatprep.subr.mxu0 %v1683_v11 }
 0x838   :  { %1599 = vmatpush3.msra.mxu0 %v1982_v51  ;;  %v1048_v51 = vrot.slane %v1792_v9, 1 }
 0x839   :  { %1600 = vmatprep.subr.mxu0 %v1683_v11 }
 0x83a   :  { %1601 = vmatpush3.msra.mxu0 %v1991_v49  ;;  %v1049_v49 = vsel %vm395_vm5, %v1047_v54, %v1048_v51  ;;  %v1052_v27 = vsel %vm395_vm5, %v1048_v51, 0.0 }
 0x83b   :  { %1602 = vmatprep.subr.mxu0 %v1683_v11 }
 0x83c   :  { %1603 = vmatpush3.msra.mxu0 %v1998_v55  ;;  %v1030_v55 = vld [vmem:[%s2246_s4 + $0x78] sm:$0xff] }
 0x83d   :  { %1604 = vmatprep.subr.mxu0 %v1683_v11 }
 0x83e   :  { %1605 = vmatpush3.msra.mxu0 %v2005_v56  ;;  %v1053_v56 = vmul.f32 %v1049_v49, %v1907_v24  ;;  %v1027_v24 = vld [vmem:[%s2246_s4 + $0x60] sm:$0xff] }
 0x83f   :  { %1606 = vmatprep.subr.mxu0 %v1683_v11 }
 0x840   :  { %1607 = vmatpush3.msra.mxu0 %v2012_v57 }
 0x841   :  { %1608 = vmatprep.subr.mxu0 %v1683_v11 }
 0x842   :  { %1609 = vmatpush3.msra.mxu0 %v53_v58  ;;  %v1029_v58 = vld [vmem:[%s2246_s4 + $0x70] sm:$0xff] }
 0x843   :  { %1610 = vmatprep.subr.mxu0 %v1683_v11 }
 0x844   :  { %1611 = vmatpush3.msra.mxu0 %v52_v59  ;;  %v1028_v59 = vld [vmem:[%s2246_s4 + $0x68] sm:$0xff] }
 0x845   :  { %1612 = vmatprep.subr.mxu0 %v1683_v11 }
 0x846   :  { %1613 = vmatpush3.msra.mxu0 %v51_v60  ;;  %v1026_v60 = vld [vmem:[%s2246_s4 + $0x58] sm:$0xff] }
 0x847   :  { %1614 = vmatprep.subr.mxu0 %v1683_v11 }
 0x848   :  { %1615 = vmatpush3.msra.mxu0 %v50_v61  ;;  %v1025_v61 = vld [vmem:[%s2246_s4 + $0x50] sm:$0xff] }
 0x849   :  { %1616 = vmatprep.subr.mxu0 %v1683_v11 }
 0x84a   :  { %1617 = vmatpush3.msra.mxu0 %v49_v62  ;;  %v1024_v62 = vld [vmem:[%s2246_s4 + $0x48] sm:$0xff] }
 0x84b   :  { %1618 = vmatprep.subr.mxu0 %v1683_v11 }
 0x84c   :  { %1619 = vmatpush3.msra.mxu0 %v48_v63  ;;  %v1023_v63 = vld [vmem:[%s2246_s4 + $0x40] sm:$0xff] }
 0x84d   :  { %1620 = vmatprep.subr.mxu0 %v1683_v11 }
 0x84e   :  { %1621 = vmatpush3.msra.mxu0 %v47_v0  ;;  %v1022_v0 = vld [vmem:[%s2246_s4 + $0x38] sm:$0xff] }
 0x84f   :  { %1622 = vmatprep.subr.mxu0 %v1683_v11 }
 0x850   :  { %1623 = vmatpush3.msra.mxu0 %v46_v1  ;;  %v1021_v1 = vld [vmem:[%s2246_s4 + $0x30] sm:$0xff] }
 0x851   :  { %1624 = vmatprep.subr.mxu0 %v1683_v11 }
 0x852   :  { %1625 = vmatpush3.msra.mxu0 %v45_v2  ;;  %v1020_v2 = vld [vmem:[%s2246_s4 + $0x28] sm:$0xff] }
 0x853   :  { %1626 = vmatprep.subr.mxu0 %v1683_v11 }
 0x854   :  { %1627 = vmatpush3.msra.mxu0 %v44_v4  ;;  %v1019_v4 = vld [vmem:[%s2246_s4 + $0x20] sm:$0xff] }
 0x8f5   :  { %v890_v30 = vpop.f32.mrf.mxu0 }
 0x8f6   :  { %v894_v15 = vmul.f32 0.001953125, %v890_v30  ;;  %v1041_v30 = vsel %vm177_vm3, %v1039_v21, %v1040_v26 }
 0x8f7   :  { %v1590_v31 = vpop.f32.mrf.mxu0 }
 0x8f8   :  { %v895_v32 = vmul.f32 %v894_v15, %v894_v15 }
 0x8fa   :  { %v897_v33 = vrot.slane %v895_v32, 7  ;;  %v1046_v32 = vmul.f32 %v1041_v30, %v1920_v36 }
 0x8fc   :  { %v899_v34 = vsub.f32 %v894_v15, %v897_v33 }
 0x8fe   :  { %v900_v37 = vmax.f32 %v899_v34, 0.0 }
 0x900   :  { %v901_v39 = vadd.f32 1e-05, %v900_v37 }
 0x902   :  { %1657 = vrsqrt.f32 %v901_v39 }
 0x90f   :  { %v1658_v40 = vpop.eup %1657 }
 0x910   :  { %v904_v41 = vrot.slane %v1658_v40, 1 }
 0x912   :  { %905 = vrot.lane.b32.xlu0 %v904_v41, %s1691_s9 }
 0x984   :  { %v906_v42 = vpop.permute.xlu0 %905 }
 0x985   :  { %v908_v43 = vmul.f32 %v906_v42, %v1856_v52 }
 0x987   :  { %910 = vrot.lane.b32.xlu1 %v908_v43, %s1692_s22 }
 0x9f9   :  { %v911_v45 = vpop.permute.xlu1 %910 }
 0x9fa   :  { %v913_v46 = vmul.f32 %v911_v45, %v894_v15  ;;  %v1054_v15 = vmul.f32 %v1052_v27, %v1910_v17 }
 0x9fc   :  { %v915_v47 = vrot.slane %v913_v46, 7 }
 0x9fe   :  { %916 = vrot.lane.b32.xlu0 %v915_v47, %s1691_s9 }
 0xa02   :  { %1055 = vrot.lane.b32.xlu0 %v1770_v3, %s1688_s29  ;;  %v1032_v3 = vld [vmem:[%s2246_s4 + $0x88] sm:$0xff]  ;;  %s1693_s4 = smov 6  }
 0xa70   :  { %v917_v48 = vpop.permute.xlu0 %916 }
 0xa71   :  { %v919_v50 = vsub.f32 %v1856_v52, %v917_v48 }
 0xa73   :  { %v920_v53 = vsel %vm177_vm3, %v908_v43, %v919_v50 }
 0xa74   :  { %922 = vrot.lane.b32.xlu1 %v920_v53, %s1692_s22  ;;  %v1056_v28 = vpop.permute.xlu0 %1055 }
 0xa78   :  { %1057 = vrot.lane.b32.xlu1 %v1792_v9, %s1688_s29  ;;  %v1061_v9 = vsel %vm69_vm0, %v1045_v29, %v1056_v28 }
 0xae6   :  { %v923_v57 = vpop.permute.xlu1 %922 }
 0xae7   :  { %1594 = vmatmul.mubr.msk.f32.vlgmr.msra.gmra.mxu1 %vm924_vm8, %v923_v57 }
 0xae8   :  { %1070 = vmatpush1.msra.mxu1 %v1030_v55  ;;  %1381 = vmatprep.mubr.msk.f32.mxu1 %vm69_vm0, %v1053_v56 }
 0xae9   :  { %1071 = vmatprep.subr.mxu1 %v1683_v11 }
 0xaea   :  { %1072 = vmatpush1.msra.mxu1 %v1029_v58  ;;  %v1058_v31 = vpop.permute.xlu1 %1057 }
 0xaeb   :  { %1073 = vmatprep.subr.mxu1 %v1683_v11  ;;  %v1062_v35 = vsel %vm69_vm0, %v1046_v32, %v1058_v31 }
 0xaec   :  { %1074 = vmatpush1.msra.mxu1 %v1028_v59 }
 0xaed   :  { %1075 = vmatprep.subr.mxu1 %v1683_v11 }
 0xaee   :  { %1076 = vmatpush1.msra.mxu1 %v1027_v24 }
 0xaef   :  { %1077 = vmatprep.subr.mxu1 %v1683_v11 }
 0xaf0   :  { %1078 = vmatpush1.msra.mxu1 %v1026_v60 }
 0xaf1   :  { %1079 = vmatprep.subr.mxu1 %v1683_v11 }
 0xaf2   :  { %1080 = vmatpush1.msra.mxu1 %v1025_v61 }
 0xaf3   :  { %1081 = vmatprep.subr.mxu1 %v1683_v11 }
 0xaf4   :  { %1082 = vmatpush1.msra.mxu1 %v1024_v62 }
 0xaf5   :  { %1083 = vmatprep.subr.mxu1 %v1683_v11 }
 0xaf6   :  { %1084 = vmatpush1.msra.mxu1 %v1023_v63 }
 0xaf7   :  { %1085 = vmatprep.subr.mxu1 %v1683_v11 }
 0xaf8   :  { %1086 = vmatpush1.msra.mxu1 %v1022_v0 }
 0xaf9   :  { %1087 = vmatprep.subr.mxu1 %v1683_v11 }
 0xafa   :  { %1088 = vmatpush1.msra.mxu1 %v1021_v1 }
 0xafb   :  { %1089 = vmatprep.subr.mxu1 %v1683_v11 }
 0xafc   :  { %1090 = vmatpush1.msra.mxu1 %v1020_v2 }
 0xafd   :  { %1091 = vmatprep.subr.mxu1 %v1683_v11 }
 0xafe   :  { %1092 = vmatpush1.msra.mxu1 %v1019_v4 }
 0xaff   :  { %1093 = vmatprep.subr.mxu1 %v1683_v11 }
 0xb00   :  { %1094 = vmatpush1.msra.mxu1 %v1018_v7 }
 0xb01   :  { %1095 = vmatprep.subr.mxu1 %v1683_v11 }
 0xb02   :  { %1096 = vmatpush1.msra.mxu1 %v1017_v8 }
 0xb03   :  { %1097 = vmatprep.subr.mxu1 %v1683_v11 }
 0xb04   :  { %1098 = vmatpush1.msra.mxu1 %v1016_v13 }
 0xb05   :  { %1099 = vmatprep.subr.mxu1 %v1683_v11 }
 0xb06   :  { %1100 = vmatpush1.msra.mxu1 %v1015_v14 }
 0xb07   :  { %1117 = vmatprep.subr.mxu1 %v1683_v11 }
 0xb08   :  { %1118 = vmatpush2.msra.mxu1 %v1038_v16 }
 0xb09   :  { %1119 = vmatprep.subr.mxu1 %v1683_v11 }
 0xb0a   :  { %1120 = vmatpush2.msra.mxu1 %v1037_v18 }
 0xb0b   :  { %1121 = vmatprep.subr.mxu1 %v1683_v11 }
 0xb0c   :  { %1122 = vmatpush2.msra.mxu1 %v1036_v19 }
 0xb0d   :  { %1123 = vmatprep.subr.mxu1 %v1683_v11 }
 0xb0e   :  { %1124 = vmatpush2.msra.mxu1 %v1035_v20 }
 0xb0f   :  { %1125 = vmatprep.subr.mxu1 %v1683_v11 }
 0xb10   :  { %1126 = vmatpush2.msra.mxu1 %v1034_v22 }
 0xb11   :  { %1127 = vmatprep.subr.mxu1 %v1683_v11 }
 0xb12   :  { %1128 = vmatpush2.msra.mxu1 %v1033_v23 }
 0xb13   :  { %1129 = vmatprep.subr.mxu1 %v1683_v11 }
 0xb14   :  { %1130 = vmatpush2.msra.mxu1 %v1032_v3 }
 0xb15   :  { %1131 = vmatprep.subr.mxu1 %v1683_v11 }
 0xb16   :  { %1132 = vmatpush2.msra.mxu1 %v1031_v38 }
 0xb17   :  { %1134 = vmatmul.mubr.f32.vlgmr.msra.gmra.mxu1 %v1061_v9  ;;  %1631 = vmatprep.subr.mxu1 %v1683_v11 }
 0xb18   :  { %1382 = vmatprep.mubr.msk.f32.mxu1 %vm69_vm0, %v1054_v15  ;;  %1632 = vmatpush3.msk.msra.mxu1 %vm927_vm7, %v2096_v44 }
 0xb1b   :  { %1139 = vmatmul.mubr.f32.gmra.mxu1 %v1062_v35 }
 0xb1c   :  { %1633 = vmatprep.mubr.msk.f32.mxu1 %vm1684_vm1, %v1683_v11 }
 0xba7   :  { %v997_v17 = vpop.f32.mrf.mxu1 }
 0xba8   :  { %v1004_v20 = vrot.slane %v997_v17, %v1895_v10  ;;  %v1010_v23 = vrot.slane %v997_v17, %v1897_v12 }
 0xba9   :  { %v1595_v33 = vpop.f32.mrf.mxu1 }
 0xbaa   :  { %v1005_v21 = vmul.f32 %v1004_v20, %v2060_v6  ;;  %v1006_v22 = vmul.f32 %v2058_v5, %v1004_v20 }
 0xbac   :  { %v1011_v3 = vadd.f32 %v1010_v23, %v1005_v21 }
 0xbae   :  { %v1013_v9 = vmax.f32 %v1011_v3, 0.0 }
 0xbd7   :  { %v1135_v34 = vpop.f32.mrf.mxu1 }
 0xbd8   :  { %v1151_v40 = vmul.f32 %v1135_v34, %v1135_v34 }
 0xbd9   :  { %v1137_v37 = vpop.f32.mrf.mxu1 }
 0xbdb   :  { %v1140_v39 = vpop.f32.mrf.mxu1 }
 0xbdc   :  { %v1144_v41 = vadd.f32 %v1140_v39, %v1135_v34  ;;  %v1152_v42 = vmul.f32 %v1140_v39, %v1140_v39 }
 0xbdd   :  { %v1142_v36 = vpop.f32.mrf.mxu1 }
 0xbde   :  { %v1145_v43 = vrot.slane %v1144_v41, 4  ;;  %v1153_v45 = vadd.f32 %v1152_v42, %v1151_v40 }
 0xbe0   :  { %v1146_v46 = vadd.f32 %v1145_v43, %v1144_v41  ;;  %v1154_v47 = vrot.slane %v1153_v45, 4 }
 0xbe2   :  { %v1147_v44 = vrot.slane %v1146_v46, 2  ;;  %v1155_v48 = vadd.f32 %v1154_v47, %v1153_v45 }
 0xbe4   :  { %v1148_v50 = vadd.f32 %v1147_v44, %v1146_v46  ;;  %v1156_v53 = vrot.slane %v1155_v48, 2 }
 0xbe6   :  { %v1149_v54 = vrot.slane %v1148_v50, 1  ;;  %v1157_v51 = vadd.f32 %v1156_v53, %v1155_v48 }
 0xbe8   :  { %v1158_v11 = vrot.slane %v1157_v51, 1  ;;  %v1150_v49 = vadd.f32 %v1149_v54, %v1148_v50 }
 0xbea   :  { %v1159_v55 = vadd.f32 %v1158_v11, %v1157_v51 }
 0xbec   :  { %v1160_v56 = vsel %vm177_vm3, %v1150_v49, %v1159_v55 }
 0xbed   :  { %1629 = vmatmul.mubr.f32.vlgmr.msra.gmra.mxu0 %v1160_v56 }
 0xcad   :  { %v1227_v57 = vpop.f32.mrf.mxu0 }
 0xcae   :  { %v1231_v58 = vmul.f32 0.001953125, %v1227_v57 }
 0xcaf   :  { %v1630_v59 = vpop.f32.mrf.mxu0 }
 0xcb0   :  { %v1232_v24 = vmul.f32 %v1231_v58, %v1231_v58 }
 0xcb2   :  { %v1234_v60 = vrot.slane %v1232_v24, 7 }
 0xcb4   :  { %v1236_v61 = vsub.f32 %v1231_v58, %v1234_v60 }
 0xcb6   :  { %v1237_v62 = vmax.f32 %v1236_v61, 0.0 }
 0xcb8   :  { %v1238_v63 = vadd.f32 1e-05, %v1237_v62 }
 0xcba   :  { %1659 = vrsqrt.f32 %v1238_v63 }
 0xcc7   :  { %v1660_v0 = vpop.eup %1659 }
 0xcc8   :  { %v1241_v1 = vrot.slane %v1660_v0, 1 }
 0xcca   :  { %1242 = vrot.lane.b32.xlu0 %v1241_v1, %s1693_s4 }
 0xd3c   :  { %v1243_v2 = vpop.permute.xlu0 %1242 }
 0xd3d   :  { %v1245_v4 = vmul.f32 %v1243_v2, %v1856_v52 }
 0xd3f   :  { %1247 = vrot.lane.b32.xlu1 %v1245_v4, %s1694_s19 }
 0xdb1   :  { %v1248_v7 = vpop.permute.xlu1 %1247 }
 0xdb2   :  { %v1250_v8 = vmul.f32 %v1248_v7, %v1231_v58 }
 0xdb4   :  { %v1252_v13 = vrot.slane %v1250_v8, 7 }
 0xdb6   :  { %1253 = vrot.lane.b32.xlu0 %v1252_v13, %s1693_s4 }
 0xe28   :  { %v1254_v14 = vpop.permute.xlu0 %1253 }
 0xe29   :  { %v1256_v16 = vsub.f32 %v1856_v52, %v1254_v14  ;;  %v1012_v52 = vadd.f32 %v1010_v23, %v1006_v22 }
 0xe2b   :  { %v1257_v18 = vsel %vm177_vm3, %v1245_v4, %v1256_v16  ;;  %v1014_v6 = vmax.f32 %v1012_v52, 0.0 }
 0xe2c   :  { %1259 = vrot.lane.b32.xlu1 %v1257_v18, %s1694_s19 }
 0xe9e   :  { %v1260_v19 = vpop.permute.xlu1 %1259 }
 0xe9f   :  { %1634 = vmatmul.mubr.msk.f32.vlgmr.msra.gmra.mxu1 %vm924_vm8, %v1260_v19 }
 0xf5f   :  { %v1329_v25 = vpop.f32.mrf.mxu1 }
 0xf60   :  { %v1336_v26 = vrot.slane %v1329_v25, %v1895_v10  ;;  %v1342_v29 = vrot.slane %v1329_v25, %v1897_v12 }
 0xf61   :  { %v1635_v27 = vpop.f32.mrf.mxu1 }
 0xf62   :  { %v1337_v28 = vmul.f32 %v1336_v26, %v1135_v34  ;;  %v1338_v38 = vmul.f32 %v1336_v26, %v1140_v39 }
 0xf64   :  { %v1343_v30 = vadd.f32 %v1342_v29, %v1337_v28  ;;  %v1344_v15 = vadd.f32 %v1342_v29, %v1338_v38 }
 0xf66   :  { %v1345_v31 = vmax.f32 %v1343_v30, 0.0  ;;  %v1346_v5 = vmax.f32 %v1344_v15, 0.0 }
 0xf68   :  { %v1347_v32 = vadd.f32 %v1345_v31, %v1013_v9  ;;  %v1348_v35 = vadd.f32 %v1346_v5, %v1014_v6 }
 0xf6a   :  { %1349 = vst [vmem:[#allocation2] sm:$0xff] %v1347_v32  ;;  %1350 = vst [vmem:[#allocation2 + $0x8] sm:$0xff] %v1348_v35 }
 0xf6b   :  { %1672 = shalt.err (!%p1669_p4)
}
 0xf6c   :  { %s1696_s0 = smov 128   ;;  %s1697_s21 = smov 8  }
 0xf6d   :  { %1362 = dma.vmem_to_hbm [thread:$0]  %s1357_s1, 256, %s2253_s11, [#allocation3], %s1696_s0, %s1696_s0, %s1697_s21  }
 0xf6e   :  { %1681 = dma.done.wait [#allocation3], 256  }
 0xf6f   :  { %1682 = vsyncadd [#allocation3], 4294967040 }
 0xf70   :  { %1366 = vsyncpa [#allocation3], 1 }

</bundles_post_ra>
